<compile_context>
chip_gen: v7x
topology: tpu7x:2x2x1
jax: 0.10.0
libtpu: 0.0.40
codegen_flags: <defaults>
</compile_context>

<pallas_src>
import math
from functools import partial

import jax
import jax.numpy as jnp
import numpy as np
from jax.experimental import pallas as pl
from jax.experimental.pallas import tpu as pltpu

LANE = 128      # vreg lane width (last dim)
SUBLANE = 8     # f32 sublane count (second-last dim)


def _round_up(v, m):
    return ((v + m - 1) // m) * m


# ------------------------------------------------------------------
# Kernel: full residual stack fused, one (channel-tile, batch-tile) per step.
# Shapes seen by the kernel (all padded):
#   x:      (TC, TN, Ip)
#   w_init: (TC, Ip, Hp)          b_init: (TC, 1, Hp)
#   w_blk:  (TC, 2*NB*Hp, Hp)     b_blk:  (TC, 2*NB, Hp)
#   w_fin:  (TC, Hp, Op)          b_fin:  (TC, 1, Op)
#   out:    (TC, TN, Op)
# ------------------------------------------------------------------
def make_kernel(num_blocks: int, hidden_p: int):
    def kernel(x_ref, w_init_ref, b_init_ref, w_blk_ref, b_blk_ref,
               w_fin_ref, b_fin_ref, out_ref):
        x = x_ref[...].astype(jnp.float32)                      # (TC, TN, Ip)

        def linear(v, w, b):
            # v: (TC, TN, Fi) f32; w: (TC, Fi, Fo) already transposed;
            # b: (TC, 1, Fo) f32.  Batched MXU matmul with f32 accumulation.
            y = jnp.einsum("cnf,cfo->cno", v.astype(w.dtype), w,
                           preferred_element_type=jnp.float32)
            return y + b.astype(jnp.float32)

        h = linear(x, w_init_ref[...], b_init_ref[...])          # (TC, TN, Hp)

        b_blk = b_blk_ref[...].astype(jnp.float32)               # (TC, 2*NB, Hp)

        for blk in range(num_blocks):
            # Packed weights: rows [2b*Hp,(2b+1)*Hp)   -> first  linear of block b
            #                 rows [(2b+1)*Hp,(2b+2)*Hp) -> second linear of block b
            wa = w_blk_ref[:, pl.ds((2 * blk) * hidden_p, hidden_p), :]
            wb = w_blk_ref[:, pl.ds((2 * blk + 1) * hidden_p, hidden_p), :]
            ba = b_blk[:, 2 * blk:2 * blk + 1, :]
            bb = b_blk[:, 2 * blk + 1:2 * blk + 2, :]

            t = jnp.maximum(h, 0.0)          # activation (relu)
            t = linear(t, wa, ba)
            t = jnp.maximum(t, 0.0)          # activation (relu)
            # dropout p=0.0 (module default) -> identity
            t = linear(t, wb, bb)
            h = h + t                        # residual connection

        out = linear(h, w_fin_ref[...], b_fin_ref[...])          # (TC, TN, Op)
        out_ref[...] = out.astype(out_ref.dtype)

    return kernel


# ------------------------------------------------------------------
# Wrapper: pad / pack / transpose params, build BlockSpecs, call pallas_call.
# ------------------------------------------------------------------
def residual_net_forward(x_ncf, params, num_blocks: int, *,
                         weight_dtype=jnp.float32,
                         tile_n: int = 256, tile_c: int = 8,
                         vmem_limit_bytes: int = 48 * 1024 * 1024):
    """x_ncf: (N, C, in_features) float32 -> (N, C, out_features) float32."""
    N, C, in_f = x_ncf.shape
    hidden = params["w_init"].shape[1]          # PyTorch layout (C, out, in)
    out_f = params["w_fin"].shape[1]

    # Lane/sublane-aligned padded sizes.
    in_p, hid_p, out_p = (_round_up(f, LANE) for f in (in_f, hidden, out_f))
    tile_n = min(tile_n, _round_up(N, SUBLANE))
    n_p = _round_up(N, tile_n)
    tile_c = min(tile_c, C)
    c_p = _round_up(C, tile_c)

    def prep_w(w, fi_p, fo_p):
        # (C, fo, fi) -> (C, fi, fo), zero-pad, cast.  Done once in the wrapper
        # so the kernel never transposes on the XLU.
        w = jnp.transpose(w, (0, 2, 1))
        return jnp.pad(w, ((0, c_p - C), (0, fi_p - w.shape[1]),
                           (0, fo_p - w.shape[2]))).astype(weight_dtype)

    def prep_b(b, fo_p):
        # (C, fo) -> (c_p, 1, fo_p); kept f32 (tiny, exact bias add on the VPU).
        return jnp.pad(b, ((0, c_p - C),
                           (0, fo_p - b.shape[1])))[:, None, :].astype(jnp.float32)

    w_init = prep_w(params["w_init"], in_p, hid_p)
    b_init = prep_b(params["b_init"], hid_p)
    w_fin = prep_w(params["w_fin"], hid_p, out_p)
    b_fin = prep_b(params["b_fin"], out_p)

    # Pack all residual-block params into single arrays (fewer, larger DMAs).
    blk_ws, blk_bs = [], []
    for b in range(num_blocks):
        for half in ("a", "b"):
            blk_ws.append(prep_w(params[f"w_blk{b}{half}"], hid_p, hid_p))
            blk_bs.append(prep_b(params[f"b_blk{b}{half}"], hid_p))
    w_blk = jnp.concatenate(blk_ws, axis=1)      # (c_p, 2*NB*hid_p, hid_p)
    b_blk = jnp.concatenate(blk_bs, axis=1)      # (c_p, 2*NB, hid_p)

    # Channel-major, zero-padded activations (layout plumbing, done by XLA).
    # TODO(synk): if upstream can produce (C, N, F) directly, drop this transpose.
    x_cnf = jnp.transpose(x_ncf, (1, 0, 2))
    x_cnf = jnp.pad(x_cnf, ((0, c_p - C), (0, n_p - N), (0, in_p - in_f)))

    grid = (c_p // tile_c, n_p // tile_n)        # inner axis = batch tiles

    def act_spec(feat):
        return pl.BlockSpec((tile_c, tile_n, feat), lambda c, n: (c, n, 0))

    def chan_spec(d1, d2):
        # Constant block index across the batch-tile axis -> weights stay
        # resident in VMEM while the inner batch loop runs (no re-DMA).
        return pl.BlockSpec((tile_c, d1, d2), lambda c, n: (c, 0, 0))

    out_cnf = pl.pallas_call(
        make_kernel(num_blocks, hid_p),
        out_shape=jax.ShapeDtypeStruct((c_p, n_p, out_p), jnp.float32),
        grid=grid,
        in_specs=[
            act_spec(in_p),                            # x
            chan_spec(in_p, hid_p),                    # w_init
            chan_spec(1, hid_p),                       # b_init
            chan_spec(2 * num_blocks * hid_p, hid_p),  # packed block weights
            chan_spec(2 * num_blocks, hid_p),          # packed block biases
            chan_spec(hid_p, out_p),                   # w_fin
            chan_spec(1, out_p),                       # b_fin
        ],
        out_specs=act_spec(out_p),
        compiler_params=pltpu.CompilerParams(
            dimension_semantics=("parallel", "parallel"),
            vmem_limit_bytes=vmem_limit_bytes),
    )(x_cnf, w_init, b_init, w_blk, b_blk, w_fin, b_fin)

    out = out_cnf[:C, :N, :out_f]                       # crop padding
    return jnp.transpose(out, (1, 0, 2))                # (N, C, out_f)


# ------------------------------------------------------------------
# Deterministic parameter construction (mirrors LinearWithChannel shapes).
# ------------------------------------------------------------------
def init_linear(key, channels, in_features, out_features, bound_scale=None):
    kw, kb = jax.random.split(key)
    bound = (1.0 / math.sqrt(in_features)) if bound_scale is None else bound_scale
    w = jax.random.uniform(kw, (channels, out_features, in_features),
                           jnp.float32, -bound, bound)
    b = jax.random.uniform(kb, (channels, out_features),
                           jnp.float32, -bound, bound)
    return w, b


def make_params(key, channels, in_features, out_features, hidden, num_blocks):
    keys = jax.random.split(key, 2 + 2 * num_blocks)
    params = {}
    params["w_init"], params["b_init"] = init_linear(keys[0], channels,
                                                     in_features, hidden)
    for b in range(num_blocks):
        wa, ba = init_linear(keys[1 + 2 * b], channels, hidden, hidden)
        # second linear of each block: zero_initialization -> uniform(-1e-3, 1e-3)
        wb, bb = init_linear(keys[2 + 2 * b], channels, hidden, hidden,
                             bound_scale=1e-3)
        params[f"w_blk{b}a"], params[f"b_blk{b}a"] = wa, ba
        params[f"w_blk{b}b"], params[f"b_blk{b}b"] = wb, bb
    params["w_fin"], params["b_fin"] = init_linear(keys[-1], channels,
                                                   hidden, out_features)
    return params


# ------------------------------------------------------------------
# Pure-JAX reference (matches the PyTorch forward exactly).
# ------------------------------------------------------------------
def reference_forward(x, params, num_blocks):
    def lin(v, w, b):
        # v: (N, C, F_in), w: (C, F_out, F_in), b: (C, F_out)
        return jnp.einsum("ncf,cof->nco", v, w) + b

    h = lin(x, params["w_init"], params["b_init"])
    for b in range(num_blocks):
        t = jax.nn.relu(h)
        t = lin(t, params[f"w_blk{b}a"], params[f"b_blk{b}a"])
        t = jax.nn.relu(t)
        t = lin(t, params[f"w_blk{b}b"], params[f"b_blk{b}b"])
        h = h + t
    return lin(h, params["w_fin"], params["b_fin"])


if __name__ == "__main__":
    # Small shapes consistent with the (batch, channels, features) convention.
    N, C = 2, 4
    IN_F, HIDDEN, OUT_F = 16, 32, 8
    NUM_BLOCKS = 2

    key = jax.random.PRNGKey(0)
    kx, kp = jax.random.split(key)
    x = jax.random.normal(kx, (N, C, IN_F), jnp.float32)
    params = make_params(kp, C, IN_F, OUT_F, HIDDEN, NUM_BLOCKS)

    run = jax.jit(partial(residual_net_forward, num_blocks=NUM_BLOCKS))
    out = jax.block_until_ready(run(x, params))

    ref = reference_forward(x, params, NUM_BLOCKS)
    np.testing.assert_allclose(np.asarray(out), np.asarray(ref),
                               rtol=1e-5, atol=1e-5)
    assert out.shape == (N, C, OUT_F)
    print("KERNEL_OK")
</pallas_src>

<mosaic_0001>
module attributes {stable_mosaic.version = 11 : i64} {
  func.func @kernel(%arg0: i32, %arg1: i32, %arg2: memref<4x8x128xf32, #tpu.memory_space<vmem>>, %arg3: memref<4x128x128xf32, #tpu.memory_space<vmem>>, %arg4: memref<4x1x128xf32, #tpu.memory_space<vmem>>, %arg5: memref<4x512x128xf32, #tpu.memory_space<vmem>>, %arg6: memref<4x4x128xf32, #tpu.memory_space<vmem>>, %arg7: memref<4x128x128xf32, #tpu.memory_space<vmem>>, %arg8: memref<4x1x128xf32, #tpu.memory_space<vmem>>, %arg9: memref<4x8x128xf32, #tpu.memory_space<vmem>>) attributes {dimension_semantics = [#tpu.dimension_semantics<parallel>, #tpu.dimension_semantics<parallel>], iteration_bounds = array<i64: 1, 1>, scalar_prefetch = 0 : i64, scratch_operands = 0 : i64, tpu.core_type = #tpu.core_type<tc>, window_params = [{transform_indices = @transform_0, window_bounds = array<i64: 4, 8, 128>}, {transform_indices = @transform_1, window_bounds = array<i64: 4, 128, 128>}, {transform_indices = @transform_2, window_bounds = array<i64: 4, 1, 128>}, {transform_indices = @transform_3, window_bounds = array<i64: 4, 512, 128>}, {transform_indices = @transform_4, window_bounds = array<i64: 4, 4, 128>}, {transform_indices = @transform_5, window_bounds = array<i64: 4, 128, 128>}, {transform_indices = @transform_6, window_bounds = array<i64: 4, 1, 128>}, {transform_indices = @transform_7, window_bounds = array<i64: 4, 8, 128>}]} {
    %c0 = arith.constant 0 : index
    %c0_0 = arith.constant 0 : index
    %c0_1 = arith.constant 0 : index
    %0 = vector.load %arg2[%c0, %c0_0, %c0_1] : memref<4x8x128xf32, #tpu.memory_space<vmem>>, vector<4x8x128xf32>
    %c0_2 = arith.constant 0 : index
    %c0_3 = arith.constant 0 : index
    %c0_4 = arith.constant 0 : index
    %1 = vector.load %arg3[%c0_2, %c0_3, %c0_4] : memref<4x128x128xf32, #tpu.memory_space<vmem>>, vector<4x128x128xf32>
    %c0_5 = arith.constant 0 : index
    %c0_6 = arith.constant 0 : index
    %c0_7 = arith.constant 0 : index
    %2 = vector.load %arg4[%c0_5, %c0_6, %c0_7] : memref<4x1x128xf32, #tpu.memory_space<vmem>>, vector<4x1x128xf32>
    "tpu.trace_start"() <{level = 10 : i32, message = "cnf,cfo->cno"}> : () -> ()
    %cst = arith.constant dense<0.000000e+00> : vector<4x8x128xf32>
    %3 = tpu.matmul %0, %1, %cst {dimension_numbers = #tpu.dot_dimension_numbers<[2], [1], [1], [2], [0, 0, 0, 1, 1, 2], [0], [0]>} : vector<4x8x128xf32>, vector<4x128x128xf32>, vector<4x8x128xf32> -> vector<4x8x128xf32>
    "tpu.trace_stop"() : () -> ()
    %4 = vector.broadcast %2 : vector<4x1x128xf32> to vector<4x8x128xf32>
    %5 = arith.addf %3, %4 : vector<4x8x128xf32>
    %c0_8 = arith.constant 0 : index
    %c0_9 = arith.constant 0 : index
    %c0_10 = arith.constant 0 : index
    %6 = vector.load %arg6[%c0_8, %c0_9, %c0_10] : memref<4x4x128xf32, #tpu.memory_space<vmem>>, vector<4x4x128xf32>
    %c0_11 = arith.constant 0 : index
    %c0_12 = arith.constant 0 : index
    %c0_13 = arith.constant 0 : index
    %7 = vector.load %arg5[%c0_11, %c0_12, %c0_13] : memref<4x512x128xf32, #tpu.memory_space<vmem>>, vector<4x128x128xf32>
    %c0_14 = arith.constant 0 : index
    %c128 = arith.constant 128 : index
    %c0_15 = arith.constant 0 : index
    %8 = vector.load %arg5[%c0_14, %c128, %c0_15] : memref<4x512x128xf32, #tpu.memory_space<vmem>>, vector<4x128x128xf32>
    %9 = vector.extract_strided_slice %6 {offsets = [0, 0, 0], sizes = [4, 1, 128], strides = [1, 1, 1]} : vector<4x4x128xf32> to vector<4x1x128xf32>
    %10 = vector.extract_strided_slice %6 {offsets = [0, 1, 0], sizes = [4, 1, 128], strides = [1, 1, 1]} : vector<4x4x128xf32> to vector<4x1x128xf32>
    %cst_16 = arith.constant 0.000000e+00 : f32
    %11 = vector.broadcast %cst_16 : f32 to vector<4x8x128xf32>
    %12 = arith.maximumf %5, %11 : vector<4x8x128xf32>
    "tpu.trace_start"() <{level = 10 : i32, message = "cnf,cfo->cno"}> : () -> ()
    %cst_17 = arith.constant dense<0.000000e+00> : vector<4x8x128xf32>
    %13 = tpu.matmul %12, %7, %cst_17 {dimension_numbers = #tpu.dot_dimension_numbers<[2], [1], [1], [2], [0, 0, 0, 1, 1, 2], [0], [0]>} : vector<4x8x128xf32>, vector<4x128x128xf32>, vector<4x8x128xf32> -> vector<4x8x128xf32>
    "tpu.trace_stop"() : () -> ()
    %14 = vector.broadcast %9 : vector<4x1x128xf32> to vector<4x8x128xf32>
    %15 = arith.addf %13, %14 : vector<4x8x128xf32>
    %cst_18 = arith.constant 0.000000e+00 : f32
    %16 = vector.broadcast %cst_18 : f32 to vector<4x8x128xf32>
    %17 = arith.maximumf %15, %16 : vector<4x8x128xf32>
    "tpu.trace_start"() <{level = 10 : i32, message = "cnf,cfo->cno"}> : () -> ()
    %cst_19 = arith.constant dense<0.000000e+00> : vector<4x8x128xf32>
    %18 = tpu.matmul %17, %8, %cst_19 {dimension_numbers = #tpu.dot_dimension_numbers<[2], [1], [1], [2], [0, 0, 0, 1, 1, 2], [0], [0]>} : vector<4x8x128xf32>, vector<4x128x128xf32>, vector<4x8x128xf32> -> vector<4x8x128xf32>
    "tpu.trace_stop"() : () -> ()
    %19 = vector.broadcast %10 : vector<4x1x128xf32> to vector<4x8x128xf32>
    %20 = arith.addf %18, %19 : vector<4x8x128xf32>
    %21 = arith.addf %5, %20 : vector<4x8x128xf32>
    %c0_20 = arith.constant 0 : index
    %c256 = arith.constant 256 : index
    %c0_21 = arith.constant 0 : index
    %22 = vector.load %arg5[%c0_20, %c256, %c0_21] : memref<4x512x128xf32, #tpu.memory_space<vmem>>, vector<4x128x128xf32>
    %c0_22 = arith.constant 0 : index
    %c384 = arith.constant 384 : index
    %c0_23 = arith.constant 0 : index
    %23 = vector.load %arg5[%c0_22, %c384, %c0_23] : memref<4x512x128xf32, #tpu.memory_space<vmem>>, vector<4x128x128xf32>
    %24 = vector.extract_strided_slice %6 {offsets = [0, 2, 0], sizes = [4, 1, 128], strides = [1, 1, 1]} : vector<4x4x128xf32> to vector<4x1x128xf32>
    %25 = vector.extract_strided_slice %6 {offsets = [0, 3, 0], sizes = [4, 1, 128], strides = [1, 1, 1]} : vector<4x4x128xf32> to vector<4x1x128xf32>
    %cst_24 = arith.constant 0.000000e+00 : f32
    %26 = vector.broadcast %cst_24 : f32 to vector<4x8x128xf32>
    %27 = arith.maximumf %21, %26 : vector<4x8x128xf32>
    "tpu.trace_start"() <{level = 10 : i32, message = "cnf,cfo->cno"}> : () -> ()
    %cst_25 = arith.constant dense<0.000000e+00> : vector<4x8x128xf32>
    %28 = tpu.matmul %27, %22, %cst_25 {dimension_numbers = #tpu.dot_dimension_numbers<[2], [1], [1], [2], [0, 0, 0, 1, 1, 2], [0], [0]>} : vector<4x8x128xf32>, vector<4x128x128xf32>, vector<4x8x128xf32> -> vector<4x8x128xf32>
    "tpu.trace_stop"() : () -> ()
    %29 = vector.broadcast %24 : vector<4x1x128xf32> to vector<4x8x128xf32>
    %30 = arith.addf %28, %29 : vector<4x8x128xf32>
    %cst_26 = arith.constant 0.000000e+00 : f32
    %31 = vector.broadcast %cst_26 : f32 to vector<4x8x128xf32>
    %32 = arith.maximumf %30, %31 : vector<4x8x128xf32>
    "tpu.trace_start"() <{level = 10 : i32, message = "cnf,cfo->cno"}> : () -> ()
    %cst_27 = arith.constant dense<0.000000e+00> : vector<4x8x128xf32>
    %33 = tpu.matmul %32, %23, %cst_27 {dimension_numbers = #tpu.dot_dimension_numbers<[2], [1], [1], [2], [0, 0, 0, 1, 1, 2], [0], [0]>} : vector<4x8x128xf32>, vector<4x128x128xf32>, vector<4x8x128xf32> -> vector<4x8x128xf32>
    "tpu.trace_stop"() : () -> ()
    %34 = vector.broadcast %25 : vector<4x1x128xf32> to vector<4x8x128xf32>
    %35 = arith.addf %33, %34 : vector<4x8x128xf32>
    %36 = arith.addf %21, %35 : vector<4x8x128xf32>
    %c0_28 = arith.constant 0 : index
    %c0_29 = arith.constant 0 : index
    %c0_30 = arith.constant 0 : index
    %37 = vector.load %arg7[%c0_28, %c0_29, %c0_30] : memref<4x128x128xf32, #tpu.memory_space<vmem>>, vector<4x128x128xf32>
    %c0_31 = arith.constant 0 : index
    %c0_32 = arith.constant 0 : index
    %c0_33 = arith.constant 0 : index
    %38 = vector.load %arg8[%c0_31, %c0_32, %c0_33] : memref<4x1x128xf32, #tpu.memory_space<vmem>>, vector<4x1x128xf32>
    "tpu.trace_start"() <{level = 10 : i32, message = "cnf,cfo->cno"}> : () -> ()
    %cst_34 = arith.constant dense<0.000000e+00> : vector<4x8x128xf32>
    %39 = tpu.matmul %36, %37, %cst_34 {dimension_numbers = #tpu.dot_dimension_numbers<[2], [1], [1], [2], [0, 0, 0, 1, 1, 2], [0], [0]>} : vector<4x8x128xf32>, vector<4x128x128xf32>, vector<4x8x128xf32> -> vector<4x8x128xf32>
    "tpu.trace_stop"() : () -> ()
    %40 = vector.broadcast %38 : vector<4x1x128xf32> to vector<4x8x128xf32>
    %41 = arith.addf %39, %40 : vector<4x8x128xf32>
    %c0_35 = arith.constant 0 : index
    %c0_36 = arith.constant 0 : index
    %c0_37 = arith.constant 0 : index
    %42 = vector.load %arg9[%c0_35, %c0_36, %c0_37] : memref<4x8x128xf32, #tpu.memory_space<vmem>>, vector<4x8x128xf32>
    tpu.vector_store %arg9[%c0_35, %c0_36, %c0_37], %41 {strides = array<i32>} : memref<4x8x128xf32, #tpu.memory_space<vmem>>, vector<4x8x128xf32>,
    return
  }
  func.func @transform_0(%arg0: i32, %arg1: i32) -> (i32, i32, i32) {
    %c0_i32 = arith.constant 0 : i32
    %c0_i32_0 = arith.constant 0 : i32
    return %arg0, %arg1, %c0_i32 : i32, i32, i32
  }
  func.func @transform_1(%arg0: i32, %arg1: i32) -> (i32, i32, i32) {
    %c0_i32 = arith.constant 0 : i32
    %c0_i32_0 = arith.constant 0 : i32
    %c0_i32_1 = arith.constant 0 : i32
    return %arg0, %c0_i32, %c0_i32_0 : i32, i32, i32
  }
  func.func @transform_2(%arg0: i32, %arg1: i32) -> (i32, i32, i32) {
    %c0_i32 = arith.constant 0 : i32
    %c0_i32_0 = arith.constant 0 : i32
    %c0_i32_1 = arith.constant 0 : i32
    return %arg0, %c0_i32, %c0_i32_0 : i32, i32, i32
  }
  func.func @transform_3(%arg0: i32, %arg1: i32) -> (i32, i32, i32) {
    %c0_i32 = arith.constant 0 : i32
    %c0_i32_0 = arith.constant 0 : i32
    %c0_i32_1 = arith.constant 0 : i32
    return %arg0, %c0_i32, %c0_i32_0 : i32, i32, i32
  }
  func.func @transform_4(%arg0: i32, %arg1: i32) -> (i32, i32, i32) {
    %c0_i32 = arith.constant 0 : i32
    %c0_i32_0 = arith.constant 0 : i32
    %c0_i32_1 = arith.constant 0 : i32
    return %arg0, %c0_i32, %c0_i32_0 : i32, i32, i32
  }
  func.func @transform_5(%arg0: i32, %arg1: i32) -> (i32, i32, i32) {
    %c0_i32 = arith.constant 0 : i32
    %c0_i32_0 = arith.constant 0 : i32
    %c0_i32_1 = arith.constant 0 : i32
    return %arg0, %c0_i32, %c0_i32_0 : i32, i32, i32
  }
  func.func @transform_6(%arg0: i32, %arg1: i32) -> (i32, i32, i32) {
    %c0_i32 = arith.constant 0 : i32
    %c0_i32_0 = arith.constant 0 : i32
    %c0_i32_1 = arith.constant 0 : i32
    return %arg0, %c0_i32, %c0_i32_0 : i32, i32, i32
  }
  func.func @transform_7(%arg0: i32, %arg1: i32) -> (i32, i32, i32) {
    %c0_i32 = arith.constant 0 : i32
    %c0_i32_0 = arith.constant 0 : i32
    return %arg0, %arg1, %c0_i32 : i32, i32, i32
  }
}

</mosaic_0001>

<bundles_post_ra>
// kernel: residual_net_forward.1
= control target key start
LH: loop header
LB: loop body
LE: loop exit
PB: predicated region body
PF: predicated region fallthrough
CT: control target
= control target key end

     0   :  { %v4089_v0 = vmov 0.0|0.0   ;;  %vm4090_vm0 = vmmov 0   ;;  %v4091_v8 = vmov 0.0   ;;  %s5678_s1 = inlined_call_operand.vmem [shape: f32[4,128,128], index: 1, kind: input, shape index: {}]   ;;  %s5679_s0 = inlined_call_operand.vmem [shape: f32[4,8,128], index: 0, kind: input, shape index: {}]   ;;  %s5680_s3 = inlined_call_operand.vmem [shape: f32[4,512,128], index: 3, kind: input, shape index: {}]   ;;  %s5681_s2 = inlined_call_operand.vmem [shape: f32[4,1,128], index: 2, kind: input, shape index: {}]   ;;  %s5682_s4 = inlined_call_operand.vmem [shape: f32[4,4,128], index: 4, kind: input, shape index: {}]   ;;  %s5683_s5 = inlined_call_operand.vmem [shape: f32[4,128,128], index: 5, kind: input, shape index: {}]   ;;  %s5684_s6 = inlined_call_operand.vmem [shape: f32[4,1,128], index: 6, kind: input, shape index: {}]   ;;  %s5685_s7 = inlined_call_operand.vmem [shape: f32[4,8,128], index: 7, kind: output, shape index: {}]  }
   0x1   :  { %3506 = vmatprep.subr.bf16.mxu0 %v4089_v0  ;;  %3530 = vmatprep.subr.bf16.mxu1 %v4089_v0  ;;  %v30_v1 = vld [vmem:[%s5678_s1] sm:$0xff]  ;;  %v31_v2 = vld [vmem:[%s5678_s1 + $0x8] sm:$0xff]  ;;  %v32_v6 = vld [vmem:[%s5678_s1 + $0x10] sm:$0xff] }
   0x2   :  { %v46_v3 = vld [vmem:[%s5678_s1 + $0x80] sm:$0xff]  ;;  %v3507_v4 = vpack.c.bf16 %v31_v2, %v30_v1  ;;  %v47_v5 = vld [vmem:[%s5678_s1 + $0x88] sm:$0xff]  ;;  %v33_v7 = vld [vmem:[%s5678_s1 + $0x18] sm:$0xff]  ;;  %2698 = vmatprep.mubr.msk.f32.mxu0 %vm4090_vm0, %v4091_v8  ;;  %2733 = vmatprep.mubr.msk.f32.mxu1 %vm4090_vm0, %v4091_v8 }
   0x3   :  { %v3531_v9 = vpack.c.bf16 %v47_v5, %v46_v3  ;;  %v48_v10 = vld [vmem:[%s5678_s1 + $0x90] sm:$0xff]  ;;  %v49_v11 = vld [vmem:[%s5678_s1 + $0x98] sm:$0xff]  ;;  %v3510_v12 = vpack.c.bf16 %v33_v7, %v32_v6  ;;  %v34_v14 = vld [vmem:[%s5678_s1 + $0x20] sm:$0xff] }
   0x4   :  { %3508 = vmatpush3.bf16.msra.mxu0 %v3507_v4  ;;  %v3534_v13 = vpack.c.bf16 %v49_v11, %v48_v10  ;;  %v35_v15 = vld [vmem:[%s5678_s1 + $0x28] sm:$0xff]  ;;  %v50_v16 = vld [vmem:[%s5678_s1 + $0xa0] sm:$0xff]  ;;  %v36_v20 = vld [vmem:[%s5678_s1 + $0x30] sm:$0xff] }
   0x5   :  { %3532 = vmatpush3.bf16.msra.mxu1 %v3531_v9  ;;  %3509 = vmatprep.subr.bf16.mxu0 %v4089_v0  ;;  %v51_v17 = vld [vmem:[%s5678_s1 + $0xa8] sm:$0xff]  ;;  %v3513_v18 = vpack.c.bf16 %v35_v15, %v34_v14  ;;  %v37_v21 = vld [vmem:[%s5678_s1 + $0x38] sm:$0xff]  ;;  %v52_v22 = vld [vmem:[%s5678_s1 + $0xb0] sm:$0xff] }
   0x6   :  { %3533 = vmatprep.subr.bf16.mxu1 %v4089_v0  ;;  %v3537_v19 = vpack.c.bf16 %v51_v17, %v50_v16  ;;  %v53_v23 = vld [vmem:[%s5678_s1 + $0xb8] sm:$0xff]  ;;  %v3516_v24 = vpack.c.bf16 %v37_v21, %v36_v20  ;;  %v38_v26 = vld [vmem:[%s5678_s1 + $0x40] sm:$0xff]  ;;  %v39_v27 = vld [vmem:[%s5678_s1 + $0x48] sm:$0xff] }
   0x7   :  { %v3540_v25 = vpack.c.bf16 %v53_v23, %v52_v22  ;;  %v54_v28 = vld [vmem:[%s5678_s1 + $0xc0] sm:$0xff]  ;;  %v55_v29 = vld [vmem:[%s5678_s1 + $0xc8] sm:$0xff]  ;;  %v3519_v30 = vpack.c.bf16 %v39_v27, %v38_v26  ;;  %v40_v32 = vld [vmem:[%s5678_s1 + $0x50] sm:$0xff] }
   0x8   :  { %3511 = vmatpush3.bf16.msra.mxu0 %v3510_v12  ;;  %v3543_v31 = vpack.c.bf16 %v55_v29, %v54_v28  ;;  %v41_v33 = vld [vmem:[%s5678_s1 + $0x58] sm:$0xff]  ;;  %v56_v34 = vld [vmem:[%s5678_s1 + $0xd0] sm:$0xff]  ;;  %v42_v38 = vld [vmem:[%s5678_s1 + $0x60] sm:$0xff] }
   0x9   :  { %3535 = vmatpush3.bf16.msra.mxu1 %v3534_v13  ;;  %3512 = vmatprep.subr.bf16.mxu0 %v4089_v0  ;;  %v57_v35 = vld [vmem:[%s5678_s1 + $0xd8] sm:$0xff]  ;;  %v3522_v36 = vpack.c.bf16 %v41_v33, %v40_v32  ;;  %v43_v39 = vld [vmem:[%s5678_s1 + $0x68] sm:$0xff]  ;;  %v58_v40 = vld [vmem:[%s5678_s1 + $0xe0] sm:$0xff] }
   0xa   :  { %3536 = vmatprep.subr.bf16.mxu1 %v4089_v0  ;;  %v3546_v37 = vpack.c.bf16 %v57_v35, %v56_v34  ;;  %v59_v41 = vld [vmem:[%s5678_s1 + $0xe8] sm:$0xff]  ;;  %v3525_v42 = vpack.c.bf16 %v43_v39, %v42_v38  ;;  %v44_v44 = vld [vmem:[%s5678_s1 + $0x70] sm:$0xff]  ;;  %v45_v45 = vld [vmem:[%s5678_s1 + $0x78] sm:$0xff] }
   0xb   :  { %v3549_v43 = vpack.c.bf16 %v59_v41, %v58_v40  ;;  %v60_v46 = vld [vmem:[%s5678_s1 + $0xf0] sm:$0xff]  ;;  %v61_v47 = vld [vmem:[%s5678_s1 + $0xf8] sm:$0xff]  ;;  %v3528_v48 = vpack.c.bf16 %v45_v45, %v44_v44  ;;  %v62_v50 = vld [vmem:[%s5678_s1 + $0x100] sm:$0xff] }
   0xc   :  { %3514 = vmatpush3.bf16.msra.mxu0 %v3513_v18  ;;  %v3552_v49 = vpack.c.bf16 %v61_v47, %v60_v46  ;;  %v63_v51 = vld [vmem:[%s5678_s1 + $0x108] sm:$0xff]  ;;  %v78_v52 = vld [vmem:[%s5678_s1 + $0x180] sm:$0xff]  ;;  %v64_v58 = vld [vmem:[%s5678_s1 + $0x110] sm:$0xff] }
   0xd   :  { %3538 = vmatpush3.bf16.msra.mxu1 %v3537_v19  ;;  %3515 = vmatprep.subr.bf16.mxu0 %v4089_v0  ;;  %v79_v53 = vld [vmem:[%s5678_s1 + $0x188] sm:$0xff]  ;;  %v26_v54 = vld [vmem:[%s5679_s0] sm:$0xff]  ;;  %v3555_v55 = vpack.c.bf16 %v63_v51, %v62_v50  ;;  %v65_v59 = vld [vmem:[%s5678_s1 + $0x118] sm:$0xff] }
   0xe   :  { %3539 = vmatprep.subr.bf16.mxu1 %v4089_v0  ;;  %v27_v56 = vld [vmem:[%s5679_s0 + $0x8] sm:$0xff]  ;;  %v3579_v57 = vpack.c.bf16 %v79_v53, %v78_v52  ;;  %v80_v60 = vld [vmem:[%s5678_s1 + $0x190] sm:$0xff]  ;;  %v81_v61 = vld [vmem:[%s5678_s1 + $0x198] sm:$0xff]  ;;  %v3558_v62 = vpack.c.bf16 %v65_v59, %v64_v58 }
   0xf   :  { %v3582_v63 = vpack.c.bf16 %v81_v61, %v80_v60  ;;  %v66_v1 = vld [vmem:[%s5678_s1 + $0x120] sm:$0xff]  ;;  %v67_v2 = vld [vmem:[%s5678_s1 + $0x128] sm:$0xff]  ;;  %v68_v7 = vld [vmem:[%s5678_s1 + $0x130] sm:$0xff] }
  0x10   :  { %3517 = vmatpush3.bf16.msra.mxu0 %v3516_v24  ;;  %v82_v3 = vld [vmem:[%s5678_s1 + $0x1a0] sm:$0xff]  ;;  %v83_v4 = vld [vmem:[%s5678_s1 + $0x1a8] sm:$0xff]  ;;  %v3561_v5 = vpack.c.bf16 %v67_v2, %v66_v1  ;;  %v69_v9 = vld [vmem:[%s5678_s1 + $0x138] sm:$0xff] }
  0x11   :  { %3541 = vmatpush3.bf16.msra.mxu1 %v3540_v25  ;;  %3518 = vmatprep.subr.bf16.mxu0 %v4089_v0  ;;  %v3585_v6 = vpack.c.bf16 %v83_v4, %v82_v3  ;;  %v84_v10 = vld [vmem:[%s5678_s1 + $0x1b0] sm:$0xff]  ;;  %v85_v11 = vld [vmem:[%s5678_s1 + $0x1b8] sm:$0xff]  ;;  %v3564_v12 = vpack.c.bf16 %v69_v9, %v68_v7  ;;  %v70_v14 = vld [vmem:[%s5678_s1 + $0x140] sm:$0xff] }
  0x12   :  { %3542 = vmatprep.subr.bf16.mxu1 %v4089_v0  ;;  %v3588_v13 = vpack.c.bf16 %v85_v11, %v84_v10  ;;  %v71_v15 = vld [vmem:[%s5678_s1 + $0x148] sm:$0xff]  ;;  %v86_v16 = vld [vmem:[%s5678_s1 + $0x1c0] sm:$0xff]  ;;  %v72_v20 = vld [vmem:[%s5678_s1 + $0x150] sm:$0xff] }
  0x13   :  { %v87_v17 = vld [vmem:[%s5678_s1 + $0x1c8] sm:$0xff]  ;;  %v3567_v18 = vpack.c.bf16 %v71_v15, %v70_v14  ;;  %v73_v21 = vld [vmem:[%s5678_s1 + $0x158] sm:$0xff]  ;;  %v88_v22 = vld [vmem:[%s5678_s1 + $0x1d0] sm:$0xff] }
  0x14   :  { %3520 = vmatpush3.bf16.msra.mxu0 %v3519_v30  ;;  %v3591_v19 = vpack.c.bf16 %v87_v17, %v86_v16  ;;  %v89_v23 = vld [vmem:[%s5678_s1 + $0x1d8] sm:$0xff]  ;;  %v3570_v24 = vpack.c.bf16 %v73_v21, %v72_v20  ;;  %v74_v26 = vld [vmem:[%s5678_s1 + $0x160] sm:$0xff]  ;;  %v75_v27 = vld [vmem:[%s5678_s1 + $0x168] sm:$0xff] }
  0x15   :  { %3544 = vmatpush3.bf16.msra.mxu1 %v3543_v31  ;;  %3521 = vmatprep.subr.bf16.mxu0 %v4089_v0  ;;  %v3594_v25 = vpack.c.bf16 %v89_v23, %v88_v22  ;;  %v90_v28 = vld [vmem:[%s5678_s1 + $0x1e0] sm:$0xff]  ;;  %v91_v29 = vld [vmem:[%s5678_s1 + $0x1e8] sm:$0xff]  ;;  %v3573_v30 = vpack.c.bf16 %v75_v27, %v74_v26  ;;  %v76_v32 = vld [vmem:[%s5678_s1 + $0x170] sm:$0xff] }
  0x16   :  { %3545 = vmatprep.subr.bf16.mxu1 %v4089_v0  ;;  %v3597_v31 = vpack.c.bf16 %v91_v29, %v90_v28  ;;  %v77_v33 = vld [vmem:[%s5678_s1 + $0x178] sm:$0xff]  ;;  %v92_v34 = vld [vmem:[%s5678_s1 + $0x1f0] sm:$0xff]  ;;  %v406_v38 = vld [vmem:[%s5680_s3] sm:$0xff] }
  0x17   :  { %v93_v35 = vld [vmem:[%s5678_s1 + $0x1f8] sm:$0xff]  ;;  %v407_v39 = vld [vmem:[%s5680_s3 + $0x8] sm:$0xff]  ;;  %v422_v40 = vld [vmem:[%s5680_s3 + $0x200] sm:$0xff] }
  0x18   :  { %3523 = vmatpush3.bf16.msra.mxu0 %v3522_v36  ;;  %v3576_v36 = vpack.c.bf16 %v77_v33, %v76_v32  ;;  %v423_v41 = vld [vmem:[%s5680_s3 + $0x208] sm:$0xff]  ;;  %v29_v44 = vld [vmem:[%s5679_s0 + $0x18] sm:$0xff]  ;;  %v408_v46 = vld [vmem:[%s5680_s3 + $0x10] sm:$0xff] }
  0x19   :  { %3547 = vmatpush3.bf16.msra.mxu1 %v3546_v37  ;;  %3524 = vmatprep.subr.bf16.mxu0 %v4089_v0  ;;  %v3600_v37 = vpack.c.bf16 %v93_v35, %v92_v34  ;;  %v3627_v45 = vpack.c.bf16 %v423_v41, %v422_v40  ;;  %v409_v47 = vld [vmem:[%s5680_s3 + $0x18] sm:$0xff]  ;;  %v410_v52 = vld [vmem:[%s5680_s3 + $0x20] sm:$0xff]  ;;  %v411_v53 = vld [vmem:[%s5680_s3 + $0x28] sm:$0xff] }
  0x1a   :  { %3548 = vmatprep.subr.bf16.mxu1 %v4089_v0  ;;  %v3606_v50 = vpack.c.bf16 %v409_v47, %v408_v46  ;;  %v412_v58 = vld [vmem:[%s5680_s3 + $0x30] sm:$0xff]  ;;  %v413_v59 = vld [vmem:[%s5680_s3 + $0x38] sm:$0xff]  ;;  %v414_v1 = vld [vmem:[%s5680_s3 + $0x40] sm:$0xff] }
  0x1b   :  { %v428_v60 = vld [vmem:[%s5680_s3 + $0x230] sm:$0xff]  ;;  %v429_v61 = vld [vmem:[%s5680_s3 + $0x238] sm:$0xff]  ;;  %v415_v2 = vld [vmem:[%s5680_s3 + $0x48] sm:$0xff] }
  0x1c   :  { %3526 = vmatpush3.bf16.msra.mxu0 %v3525_v42  ;;  %v28_v42 = vld [vmem:[%s5679_s0 + $0x10] sm:$0xff]  ;;  %v430_v3 = vld [vmem:[%s5680_s3 + $0x240] sm:$0xff]  ;;  %v431_v4 = vld [vmem:[%s5680_s3 + $0x248] sm:$0xff] }
  0x1d   :  { %3550 = vmatpush3.bf16.msra.mxu1 %v3549_v43  ;;  %3527 = vmatprep.subr.bf16.mxu0 %v4089_v0  ;;  %v3603_v43 = vpack.c.bf16 %v407_v39, %v406_v38  ;;  %v416_v7 = vld [vmem:[%s5680_s3 + $0x50] sm:$0xff]  ;;  %v417_v9 = vld [vmem:[%s5680_s3 + $0x58] sm:$0xff]  ;;  %v418_v14 = vld [vmem:[%s5680_s3 + $0x60] sm:$0xff] }
  0x1e   :  { %3551 = vmatprep.subr.bf16.mxu1 %v4089_v0  ;;  %v432_v10 = vld [vmem:[%s5680_s3 + $0x250] sm:$0xff]  ;;  %v433_v11 = vld [vmem:[%s5680_s3 + $0x258] sm:$0xff]  ;;  %v419_v15 = vld [vmem:[%s5680_s3 + $0x68] sm:$0xff] }
  0x1f   :  { %v434_v16 = vld [vmem:[%s5680_s3 + $0x260] sm:$0xff]  ;;  %v435_v17 = vld [vmem:[%s5680_s3 + $0x268] sm:$0xff]  ;;  %v420_v20 = vld [vmem:[%s5680_s3 + $0x70] sm:$0xff] }
  0x20   :  { %3529 = vmatpush3.bf16.msra.mxu0 %v3528_v48  ;;  %v424_v48 = vld [vmem:[%s5680_s3 + $0x210] sm:$0xff]  ;;  %v421_v21 = vld [vmem:[%s5680_s3 + $0x78] sm:$0xff]  ;;  %v2250_v26 = vld [vmem:[%s5681_s2] ss:$0 sm:$0xff] }
  0x21   :  { %3553 = vmatpush3.bf16.msra.mxu1 %v3552_v49  ;;  %3554 = vmatprep.subr.bf16.mxu0 %v4089_v0  ;;  %v425_v49 = vld [vmem:[%s5680_s3 + $0x218] sm:$0xff]  ;;  %v436_v22 = vld [vmem:[%s5680_s3 + $0x270] sm:$0xff]  ;;  %v3624_v23 = vpack.c.bf16 %v421_v21, %v420_v20  ;;  %v2251_v27 = vld [vmem:[%s5681_s2 + $0x1] ss:$0 sm:$0xff] }
  0x22   :  { %3578 = vmatprep.subr.bf16.mxu1 %v4089_v0  ;;  %v3630_v51 = vpack.c.bf16 %v425_v49, %v424_v48  ;;  %v438_v28 = vld [vmem:[%s5680_s3 + $0x400] sm:$0xff]  ;;  %v439_v29 = vld [vmem:[%s5680_s3 + $0x408] sm:$0xff]  ;;  %v440_v41 = vld [vmem:[%s5680_s3 + $0x410] sm:$0xff] }
  0x23   :  { %2699 = vmatmul.mubr.f32.vlgmr.msra.gmra.mrb[0].mxu0 %v26_v54  ;;  %v426_v54 = vld [vmem:[%s5680_s3 + $0x220] sm:$0xff]  ;;  %v455_v32 = vld [vmem:[%s5680_s3 + $0x608] sm:$0xff]  ;;  %v3651_v38 = vpack.c.bf16 %v439_v29, %v438_v28 }
  0x24   :  { %2734 = vmatmul.mubr.f32.vlgmr.msra.gmra.mrb[0].mxu1 %v27_v56  ;;  %3556 = vmatpush3.bf16.msra.mxu0 %v3555_v55  ;;  %v427_v55 = vld [vmem:[%s5680_s3 + $0x228] sm:$0xff]  ;;  %v3609_v56 = vpack.c.bf16 %v411_v53, %v410_v52  ;;  %v442_v48 = vld [vmem:[%s5680_s3 + $0x420] sm:$0xff] }
  0x25   :  { %3580 = vmatpush3.bf16.msra.mxu1 %v3579_v57  ;;  %3557 = vmatprep.subr.bf16.mxu0 %v4089_v0  ;;  %v3633_v57 = vpack.c.bf16 %v427_v55, %v426_v54  ;;  %v443_v49 = vld [vmem:[%s5680_s3 + $0x428] sm:$0xff]  ;;  %v444_v54 = vld [vmem:[%s5680_s3 + $0x430] sm:$0xff]  ;;  %v445_v55 = vld [vmem:[%s5680_s3 + $0x438] sm:$0xff] }
  0x26   :  { %3581 = vmatprep.subr.bf16.mxu1 %v4089_v0  ;;  %2768 = vmatprep.mubr.msk.f32.mxu0 %vm4090_vm0, %v4091_v8  ;;  %v3657_v52 = vpack.c.bf16 %v443_v49, %v442_v48  ;;  %v2252_v20 = vld [vmem:[%s5681_s2 + $0x2] ss:$0 sm:$0xff]  ;;  %v487_v28 = vld [vmem:[%s5680_s3 + $0x288] sm:$0xff] }
  0x27   :  { %2803 = vmatprep.mubr.msk.f32.mxu1 %vm4090_vm0, %v4091_v8  ;;  %v490_v48 = vld [vmem:[%s5680_s3 + $0x2a0] sm:$0xff]  ;;  %v491_v49 = vld [vmem:[%s5680_s3 + $0x2a8] sm:$0xff] }
  0x28   :  { %3559 = vmatpush3.bf16.msra.mxu0 %v3558_v62  ;;  %v3612_v62 = vpack.c.bf16 %v413_v59, %v412_v58  ;;  %v3660_v58 = vpack.c.bf16 %v445_v55, %v444_v54  ;;  %v492_v54 = vld [vmem:[%s5680_s3 + $0x2b0] sm:$0xff]  ;;  %v493_v55 = vld [vmem:[%s5680_s3 + $0x2b8] sm:$0xff] }
  0x29   :  { %3583 = vmatpush3.bf16.msra.mxu1 %v3582_v63  ;;  %3560 = vmatprep.subr.bf16.mxu0 %v4089_v0  ;;  %v3636_v63 = vpack.c.bf16 %v429_v61, %v428_v60  ;;  %v446_v60 = vld [vmem:[%s5680_s3 + $0x440] sm:$0xff]  ;;  %v447_v61 = vld [vmem:[%s5680_s3 + $0x448] sm:$0xff] }
  0x2a   :  { %3584 = vmatprep.subr.bf16.mxu1 %v4089_v0 }
  0x2c   :  { %3562 = vmatpush3.bf16.msra.mxu0 %v3561_v5  ;;  %v3615_v5 = vpack.c.bf16 %v415_v2, %v414_v1  ;;  %v3663_v1 = vpack.c.bf16 %v447_v61, %v446_v60  ;;  %v494_v60 = vld [vmem:[%s5680_s3 + $0x2c0] sm:$0xff]  ;;  %v495_v61 = vld [vmem:[%s5680_s3 + $0x2c8] sm:$0xff] }
  0x2d   :  { %3586 = vmatpush3.bf16.msra.mxu1 %v3585_v6  ;;  %3563 = vmatprep.subr.bf16.mxu0 %v4089_v0  ;;  %v3639_v6 = vpack.c.bf16 %v431_v4, %v430_v3  ;;  %v448_v3 = vld [vmem:[%s5680_s3 + $0x450] sm:$0xff]  ;;  %v449_v4 = vld [vmem:[%s5680_s3 + $0x458] sm:$0xff] }
  0x2e   :  { %3587 = vmatprep.subr.bf16.mxu1 %v4089_v0 }
  0x30   :  { %3565 = vmatpush3.bf16.msra.mxu0 %v3564_v12  ;;  %v3618_v12 = vpack.c.bf16 %v417_v9, %v416_v7  ;;  %v3666_v7 = vpack.c.bf16 %v449_v4, %v448_v3  ;;  %v496_v3 = vld [vmem:[%s5680_s3 + $0x2d0] sm:$0xff]  ;;  %v497_v4 = vld [vmem:[%s5680_s3 + $0x2d8] sm:$0xff] }
  0x31   :  { %3589 = vmatpush3.bf16.msra.mxu1 %v3588_v13  ;;  %3566 = vmatprep.subr.bf16.mxu0 %v4089_v0  ;;  %v3642_v13 = vpack.c.bf16 %v433_v11, %v432_v10  ;;  %v450_v10 = vld [vmem:[%s5680_s3 + $0x460] sm:$0xff]  ;;  %v451_v11 = vld [vmem:[%s5680_s3 + $0x468] sm:$0xff] }
  0x32   :  { %3590 = vmatprep.subr.bf16.mxu1 %v4089_v0 }
  0x34   :  { %3568 = vmatpush3.bf16.msra.mxu0 %v3567_v18  ;;  %v3621_v18 = vpack.c.bf16 %v419_v15, %v418_v14  ;;  %v3669_v14 = vpack.c.bf16 %v451_v11, %v450_v10  ;;  %v498_v10 = vld [vmem:[%s5680_s3 + $0x2e0] sm:$0xff]  ;;  %v499_v11 = vld [vmem:[%s5680_s3 + $0x2e8] sm:$0xff] }
  0x35   :  { %3592 = vmatpush3.bf16.msra.mxu1 %v3591_v19  ;;  %3569 = vmatprep.subr.bf16.mxu0 %v4089_v0  ;;  %v3645_v19 = vpack.c.bf16 %v435_v17, %v434_v16  ;;  %v452_v16 = vld [vmem:[%s5680_s3 + $0x470] sm:$0xff]  ;;  %v453_v17 = vld [vmem:[%s5680_s3 + $0x478] sm:$0xff] }
  0x36   :  { %3593 = vmatprep.subr.bf16.mxu1 %v4089_v0  ;;  %v3672_v21 = vpack.c.bf16 %v453_v17, %v452_v16  ;;  %v500_v16 = vld [vmem:[%s5680_s3 + $0x2f0] sm:$0xff] }
  0x38   :  { %3571 = vmatpush3.bf16.msra.mxu0 %v3570_v24  ;;  %v437_v24 = vld [vmem:[%s5680_s3 + $0x278] sm:$0xff] }
  0x39   :  { %3595 = vmatpush3.bf16.msra.mxu1 %v3594_v25  ;;  %3572 = vmatprep.subr.bf16.mxu0 %v4089_v0  ;;  %v3648_v25 = vpack.c.bf16 %v437_v24, %v436_v22  ;;  %v2253_v22 = vld [vmem:[%s5681_s2 + $0x3] ss:$0 sm:$0xff] }
  0x3a   :  { %3596 = vmatprep.subr.bf16.mxu1 %v4089_v0  ;;  %v470_v24 = vld [vmem:[%s5680_s3 + $0x80] sm:$0xff] }
  0x3c   :  { %3574 = vmatpush3.bf16.msra.mxu0 %v3573_v30 }
  0x3d   :  { %3598 = vmatpush3.bf16.msra.mxu1 %v3597_v31  ;;  %3575 = vmatprep.subr.bf16.mxu0 %v4089_v0  ;;  %v454_v31 = vld [vmem:[%s5680_s3 + $0x600] sm:$0xff] }
  0x3e   :  { %3599 = vmatprep.subr.bf16.mxu1 %v4089_v0  ;;  %v3675_v40 = vpack.c.bf16 %v455_v32, %v454_v31 }
  0x40   :  { %3577 = vmatpush3.bf16.msra.mxu0 %v3576_v36 }
  0x41   :  { %3601 = vmatpush3.bf16.msra.mxu1 %v3600_v37  ;;  %3602 = vmatprep.subr.bf16.mxu0 %v4089_v0 }
  0x42   :  { %3626 = vmatprep.subr.bf16.mxu1 %v4089_v0 }
  0x43   :  { %2769 = vmatmul.mubr.f32.vlgmr.msra.gmra.mrb[2].mxu0 %v28_v42  ;;  %v441_v42 = vld [vmem:[%s5680_s3 + $0x418] sm:$0xff] }
  0x44   :  { %2804 = vmatmul.mubr.f32.vlgmr.msra.gmra.mrb[2].mxu1 %v29_v44  ;;  %3604 = vmatpush3.bf16.msra.mxu0 %v3603_v43  ;;  %v456_v44 = vld [vmem:[%s5680_s3 + $0x610] sm:$0xff]  ;;  %v3654_v46 = vpack.c.bf16 %v441_v42, %v440_v41 }
  0x45   :  { %3628 = vmatpush3.bf16.msra.mxu1 %v3627_v45  ;;  %3605 = vmatprep.subr.bf16.mxu0 %v4089_v0  ;;  %v457_v45 = vld [vmem:[%s5680_s3 + $0x618] sm:$0xff]  ;;  %v488_v42 = vld [vmem:[%s5680_s3 + $0x290] sm:$0xff] }
  0x46   :  { %3629 = vmatprep.subr.bf16.mxu1 %v4089_v0  ;;  %2838 = vmatprep.mubr.msk.f32.mxu0 %vm4090_vm0, %v4091_v8  ;;  %v3678_v47 = vpack.c.bf16 %v457_v45, %v456_v44 }
  0x47   :  { %2873 = vmatprep.mubr.msk.f32.mxu1 %vm4090_vm0, %v4091_v8 }
  0x48   :  { %3607 = vmatpush3.bf16.msra.mxu0 %v3606_v50  ;;  %v458_v50 = vld [vmem:[%s5680_s3 + $0x620] sm:$0xff] }
  0x49   :  { %3631 = vmatpush3.bf16.msra.mxu1 %v3630_v51  ;;  %3608 = vmatprep.subr.bf16.mxu0 %v4089_v0  ;;  %v459_v51 = vld [vmem:[%s5680_s3 + $0x628] sm:$0xff] }
  0x4a   :  { %3632 = vmatprep.subr.bf16.mxu1 %v4089_v0  ;;  %v3681_v53 = vpack.c.bf16 %v459_v51, %v458_v50  ;;  %v3729_v51 = vpack.c.bf16 %v491_v49, %v490_v48  ;;  %v521_v48 = vld [vmem:[%s5680_s3 + $0x698] sm:$0xff] }
  0x4c   :  { %3610 = vmatpush3.bf16.msra.mxu0 %v3609_v56  ;;  %v460_v56 = vld [vmem:[%s5680_s3 + $0x630] sm:$0xff] }
  0x4d   :  { %3634 = vmatpush3.bf16.msra.mxu1 %v3633_v57  ;;  %3611 = vmatprep.subr.bf16.mxu0 %v4089_v0  ;;  %v461_v57 = vld [vmem:[%s5680_s3 + $0x638] sm:$0xff] }
  0x4e   :  { %3635 = vmatprep.subr.bf16.mxu1 %v4089_v0  ;;  %v3684_v59 = vpack.c.bf16 %v461_v57, %v460_v56  ;;  %v3732_v57 = vpack.c.bf16 %v493_v55, %v492_v54  ;;  %v523_v54 = vld [vmem:[%s5680_s3 + $0x6a8] sm:$0xff] }
  0x50   :  { %3613 = vmatpush3.bf16.msra.mxu0 %v3612_v62  ;;  %v462_v62 = vld [vmem:[%s5680_s3 + $0x640] sm:$0xff] }
  0x51   :  { %3637 = vmatpush3.bf16.msra.mxu1 %v3636_v63  ;;  %3614 = vmatprep.subr.bf16.mxu0 %v4089_v0  ;;  %v463_v63 = vld [vmem:[%s5680_s3 + $0x648] sm:$0xff] }
  0x52   :  { %3638 = vmatprep.subr.bf16.mxu1 %v4089_v0  ;;  %v3687_v2 = vpack.c.bf16 %v463_v63, %v462_v62  ;;  %v3735_v63 = vpack.c.bf16 %v495_v61, %v494_v60  ;;  %v525_v60 = vld [vmem:[%s5680_s3 + $0x6b8] sm:$0xff] }
  0x54   :  { %3616 = vmatpush3.bf16.msra.mxu0 %v3615_v5  ;;  %v464_v5 = vld [vmem:[%s5680_s3 + $0x650] sm:$0xff] }
  0x55   :  { %3640 = vmatpush3.bf16.msra.mxu1 %v3639_v6  ;;  %3617 = vmatprep.subr.bf16.mxu0 %v4089_v0  ;;  %v465_v6 = vld [vmem:[%s5680_s3 + $0x658] sm:$0xff] }
  0x56   :  { %3641 = vmatprep.subr.bf16.mxu1 %v4089_v0  ;;  %v3690_v9 = vpack.c.bf16 %v465_v6, %v464_v5  ;;  %v3738_v6 = vpack.c.bf16 %v497_v4, %v496_v3  ;;  %v527_v3 = vld [vmem:[%s5680_s3 + $0x6c8] sm:$0xff] }
  0x58   :  { %3619 = vmatpush3.bf16.msra.mxu0 %v3618_v12  ;;  %v466_v12 = vld [vmem:[%s5680_s3 + $0x660] sm:$0xff] }
  0x59   :  { %3643 = vmatpush3.bf16.msra.mxu1 %v3642_v13  ;;  %3620 = vmatprep.subr.bf16.mxu0 %v4089_v0  ;;  %v467_v13 = vld [vmem:[%s5680_s3 + $0x668] sm:$0xff] }
  0x5a   :  { %3644 = vmatprep.subr.bf16.mxu1 %v4089_v0  ;;  %v3693_v15 = vpack.c.bf16 %v467_v13, %v466_v12  ;;  %v3741_v13 = vpack.c.bf16 %v499_v11, %v498_v10  ;;  %v529_v10 = vld [vmem:[%s5680_s3 + $0x6d8] sm:$0xff] }
  0x5c   :  { %3622 = vmatpush3.bf16.msra.mxu0 %v3621_v18  ;;  %v468_v18 = vld [vmem:[%s5680_s3 + $0x670] sm:$0xff] }
  0x5d   :  { %3646 = vmatpush3.bf16.msra.mxu1 %v3645_v19  ;;  %3623 = vmatprep.subr.bf16.mxu0 %v4089_v0  ;;  %v469_v19 = vld [vmem:[%s5680_s3 + $0x678] sm:$0xff] }
  0x5e   :  { %3647 = vmatprep.subr.bf16.mxu1 %v4089_v0 }
  0x60   :  { %3625 = vmatpush3.bf16.msra.mxu0 %v3624_v23  ;;  %v3696_v23 = vpack.c.bf16 %v469_v19, %v468_v18  ;;  %v501_v18 = vld [vmem:[%s5680_s3 + $0x2f8] sm:$0xff] }
  0x61   :  { %3649 = vmatpush3.bf16.msra.mxu1 %v3648_v25  ;;  %3650 = vmatprep.subr.bf16.mxu0 %v4089_v0  ;;  %v471_v25 = vld [vmem:[%s5680_s3 + $0x88] sm:$0xff]  ;;  %v3744_v19 = vpack.c.bf16 %v501_v18, %v500_v16 }
  0x62   :  { %3674 = vmatprep.subr.bf16.mxu1 %v4089_v0  ;;  %v531_v16 = vld [vmem:[%s5680_s3 + $0x6e8] sm:$0xff] }
  0x63   :  { %v4870_v18 = vld [vmem:[%s5682_s4 + $0x8] sm:$0xf] }
  0xf6   :  { %v188_v30 = vpop.f32.mrb[0].mxu0 }
  0xf7   :  { %v4512_v33 = vadd.f32 %v2250_v26, %v188_v30  ;;  %v258_v34 = vpop.f32.mrb[0].mxu1  ;;  %v2700_v35 = vpop.f32.mrb[1].mxu0 }
  0xf8   :  { %v4514_v36 = vadd.f32 %v2251_v27, %v258_v34  ;;  %v2735_v37 = vpop.f32.mrb[1].mxu1  ;;  %v486_v27 = vld [vmem:[%s5680_s3 + $0x280] sm:$0xff]  ;;  %v3699_v35 = vpack.c.bf16 %v471_v25, %v470_v24 }
  0xf9   :  { %v534_v39 = vmax.f32 %v4512_v33, 0.0  ;;  %v4763_v24 = vld [vmem:[%s5682_s4 + $0x4] sm:$0xf] }
  0xfa   :  { %v535_v43 = vmax.f32 %v4514_v36, 0.0 }
  0xfb   :  { %2839 = vmatmul.mubr.f32.vlgmr.msra.gmra.mrb[4].mxu0 %v534_v39  ;;  %v472_v39 = vld [vmem:[%s5680_s3 + $0x90] sm:$0xff] }
  0xfc   :  { %2874 = vmatmul.mubr.f32.vlgmr.msra.gmra.mrb[4].mxu1 %v535_v43  ;;  %3652 = vmatpush3.bf16.msra.mxu0 %v3651_v38  ;;  %v3723_v38 = vpack.c.bf16 %v487_v28, %v486_v27  ;;  %v489_v43 = vld [vmem:[%s5680_s3 + $0x298] sm:$0xff]  ;;  %v502_v27 = vld [vmem:[%s5680_s3 + $0x480] sm:$0xff]  ;;  %v503_v28 = vld [vmem:[%s5680_s3 + $0x488] sm:$0xff] }
  0xfd   :  { %3676 = vmatpush3.bf16.msra.mxu1 %v3675_v40  ;;  %3653 = vmatprep.subr.bf16.mxu0 %v4089_v0  ;;  %v473_v40 = vld [vmem:[%s5680_s3 + $0x98] sm:$0xff]  ;;  %v3726_v45 = vpack.c.bf16 %v489_v43, %v488_v42 }
  0xfe   :  { %3677 = vmatprep.subr.bf16.mxu1 %v4089_v0  ;;  %2908 = vmatprep.mubr.msk.f32.mxu0 %vm4090_vm0, %v4091_v8  ;;  %v3702_v44 = vpack.c.bf16 %v473_v40, %v472_v39 }
  0xff   :  { %2943 = vmatprep.mubr.msk.f32.mxu1 %vm4090_vm0, %v4091_v8 }
 0x100   :  { %3655 = vmatpush3.bf16.msra.mxu0 %v3654_v46  ;;  %v474_v46 = vld [vmem:[%s5680_s3 + $0xa0] sm:$0xff] }
 0x101   :  { %3679 = vmatpush3.bf16.msra.mxu1 %v3678_v47  ;;  %3656 = vmatprep.subr.bf16.mxu0 %v4089_v0  ;;  %v475_v47 = vld [vmem:[%s5680_s3 + $0xa8] sm:$0xff] }
 0x102   :  { %3680 = vmatprep.subr.bf16.mxu1 %v4089_v0  ;;  %v3705_v50 = vpack.c.bf16 %v475_v47, %v474_v46  ;;  %v520_v47 = vld [vmem:[%s5680_s3 + $0x690] sm:$0xff] }
 0x104   :  { %3658 = vmatpush3.bf16.msra.mxu0 %v3657_v52  ;;  %v476_v52 = vld [vmem:[%s5680_s3 + $0xb0] sm:$0xff] }
 0x105   :  { %3682 = vmatpush3.bf16.msra.mxu1 %v3681_v53  ;;  %3659 = vmatprep.subr.bf16.mxu0 %v4089_v0  ;;  %v477_v53 = vld [vmem:[%s5680_s3 + $0xb8] sm:$0xff] }
 0x106   :  { %3683 = vmatprep.subr.bf16.mxu1 %v4089_v0  ;;  %v3708_v56 = vpack.c.bf16 %v477_v53, %v476_v52  ;;  %v507_v52 = vld [vmem:[%s5680_s3 + $0x4a8] sm:$0xff]  ;;  %v522_v53 = vld [vmem:[%s5680_s3 + $0x6a0] sm:$0xff] }
 0x108   :  { %3661 = vmatpush3.bf16.msra.mxu0 %v3660_v58  ;;  %v478_v58 = vld [vmem:[%s5680_s3 + $0xc0] sm:$0xff] }
 0x109   :  { %3685 = vmatpush3.bf16.msra.mxu1 %v3684_v59  ;;  %3662 = vmatprep.subr.bf16.mxu0 %v4089_v0  ;;  %v479_v59 = vld [vmem:[%s5680_s3 + $0xc8] sm:$0xff] }
 0x10a   :  { %3686 = vmatprep.subr.bf16.mxu1 %v4089_v0  ;;  %v3711_v62 = vpack.c.bf16 %v479_v59, %v478_v58  ;;  %v509_v58 = vld [vmem:[%s5680_s3 + $0x4b8] sm:$0xff]  ;;  %v524_v59 = vld [vmem:[%s5680_s3 + $0x6b0] sm:$0xff] }
 0x10c   :  { %3664 = vmatpush3.bf16.msra.mxu0 %v3663_v1  ;;  %v480_v1 = vld [vmem:[%s5680_s3 + $0xd0] sm:$0xff] }
 0x10d   :  { %3688 = vmatpush3.bf16.msra.mxu1 %v3687_v2  ;;  %3665 = vmatprep.subr.bf16.mxu0 %v4089_v0  ;;  %v481_v2 = vld [vmem:[%s5680_s3 + $0xd8] sm:$0xff] }
 0x10e   :  { %3689 = vmatprep.subr.bf16.mxu1 %v4089_v0  ;;  %v3714_v5 = vpack.c.bf16 %v481_v2, %v480_v1  ;;  %v511_v1 = vld [vmem:[%s5680_s3 + $0x4c8] sm:$0xff]  ;;  %v526_v2 = vld [vmem:[%s5680_s3 + $0x6c0] sm:$0xff] }
 0x110   :  { %3667 = vmatpush3.bf16.msra.mxu0 %v3666_v7  ;;  %v482_v7 = vld [vmem:[%s5680_s3 + $0xe0] sm:$0xff] }
 0x111   :  { %3691 = vmatpush3.bf16.msra.mxu1 %v3690_v9  ;;  %3668 = vmatprep.subr.bf16.mxu0 %v4089_v0  ;;  %v483_v9 = vld [vmem:[%s5680_s3 + $0xe8] sm:$0xff] }
 0x112   :  { %3692 = vmatprep.subr.bf16.mxu1 %v4089_v0  ;;  %v3717_v12 = vpack.c.bf16 %v483_v9, %v482_v7  ;;  %v513_v7 = vld [vmem:[%s5680_s3 + $0x4d8] sm:$0xff]  ;;  %v528_v9 = vld [vmem:[%s5680_s3 + $0x6d0] sm:$0xff] }
 0x114   :  { %3670 = vmatpush3.bf16.msra.mxu0 %v3669_v14  ;;  %v484_v14 = vld [vmem:[%s5680_s3 + $0xf0] sm:$0xff] }
 0x115   :  { %3694 = vmatpush3.bf16.msra.mxu1 %v3693_v15  ;;  %3671 = vmatprep.subr.bf16.mxu0 %v4089_v0  ;;  %v485_v15 = vld [vmem:[%s5680_s3 + $0xf8] sm:$0xff] }
 0x116   :  { %v328_v26 = vpop.f32.mrb[2].mxu0  ;;  %3695 = vmatprep.subr.bf16.mxu1 %v4089_v0  ;;  %v3720_v17 = vpack.c.bf16 %v485_v15, %v484_v14  ;;  %v515_v14 = vld [vmem:[%s5680_s3 + $0x4e8] sm:$0xff]  ;;  %v530_v15 = vld [vmem:[%s5680_s3 + $0x6e0] sm:$0xff] }
 0x117   :  { %v4638_v29 = vadd.f32 %v2252_v20, %v328_v26  ;;  %v398_v30 = vpop.f32.mrb[2].mxu1  ;;  %v2770_v31 = vpop.f32.mrb[3].mxu0  ;;  %v538_v20 = vlaneseq }
 0x118   :  { %v4640_v32 = vadd.f32 %v2253_v22, %v398_v30  ;;  %v2805_v34 = vpop.f32.mrb[3].mxu1  ;;  %3673 = vmatpush3.bf16.msra.mxu0 %v3672_v21  ;;  %v518_v31 = vld [vmem:[%s5680_s3 + $0x680] sm:$0xff] }
 0x119   :  { %v536_v37 = vmax.f32 %v4638_v29, 0.0  ;;  %3697 = vmatpush3.bf16.msra.mxu1 %v3696_v23  ;;  %3698 = vmatprep.subr.bf16.mxu0 %v4089_v0  ;;  %v4750_v21 = vshrl.u32 %v538_v20, 7  ;;  %v4758_v23 = vld [vmem:[%s5682_s4] sm:$0xf]  ;;  %v519_v34 = vld [vmem:[%s5680_s3 + $0x688] sm:$0xff] }
 0x11a   :  { %v537_v41 = vmax.f32 %v4640_v32, 0.0  ;;  %3722 = vmatprep.subr.bf16.mxu1 %v4089_v0  ;;  %v3771_v43 = vpack.c.bf16 %v519_v34, %v518_v31  ;;  %v4876_v20 = vld [vmem:[%s5682_s4 + $0xc] sm:$0xf] }
 0x11b   :  { %2909 = vmatmul.mubr.f32.vlgmr.msra.gmra.mrb[6].mxu0 %v536_v37  ;;  %v4753_v22 = vsub.s32 0, %v4750_v21 }
 0x11c   :  { %2944 = vmatmul.mubr.f32.vlgmr.msra.gmra.mrb[6].mxu1 %v537_v41  ;;  %3700 = vmatpush3.bf16.msra.mxu0 %v3699_v35  ;;  %v3747_v41 = vpack.c.bf16 %v503_v28, %v502_v27  ;;  %v532_v27 = vld [vmem:[%s5680_s3 + $0x6f0] sm:$0xff]  ;;  %v533_v28 = vld [vmem:[%s5680_s3 + $0x6f8] sm:$0xff] }
 0x11d   :  { %3724 = vmatpush3.bf16.msra.mxu1 %v3723_v38  ;;  %3701 = vmatprep.subr.bf16.mxu0 %v4089_v0  ;;  %v541_v25 = vrot.slane %v4758_v23, %v4753_v22  ;;  %v545_v26 = vrot.slane %v4763_v24, %v4753_v22  ;;  %v553_v31 = vrot.slane %v4876_v20, %v4753_v22 }
 0x11e   :  { %3725 = vmatprep.subr.bf16.mxu1 %v4089_v0  ;;  %2978 = vmatprep.mubr.msk.f32.mxu0 %vm4090_vm0, %v4091_v8 }
 0x11f   :  { %3013 = vmatprep.mubr.msk.f32.mxu1 %vm4090_vm0, %v4091_v8 }
 0x120   :  { %3703 = vmatpush3.bf16.msra.mxu0 %v3702_v44  ;;  %v504_v44 = vld [vmem:[%s5680_s3 + $0x490] sm:$0xff] }
 0x121   :  { %3727 = vmatpush3.bf16.msra.mxu1 %v3726_v45  ;;  %3704 = vmatprep.subr.bf16.mxu0 %v4089_v0  ;;  %v505_v45 = vld [vmem:[%s5680_s3 + $0x498] sm:$0xff] }
 0x122   :  { %3728 = vmatprep.subr.bf16.mxu1 %v4089_v0  ;;  %v3750_v49 = vpack.c.bf16 %v505_v45, %v504_v44 }
 0x124   :  { %3706 = vmatpush3.bf16.msra.mxu0 %v3705_v50  ;;  %v3774_v50 = vpack.c.bf16 %v521_v48, %v520_v47 }
 0x125   :  { %3730 = vmatpush3.bf16.msra.mxu1 %v3729_v51  ;;  %3707 = vmatprep.subr.bf16.mxu0 %v4089_v0  ;;  %v506_v51 = vld [vmem:[%s5680_s3 + $0x4a0] sm:$0xff] }
 0x126   :  { %3731 = vmatprep.subr.bf16.mxu1 %v4089_v0  ;;  %v3753_v55 = vpack.c.bf16 %v507_v52, %v506_v51  ;;  %v1156_v52 = vld [vmem:[%s5680_s3 + $0x310] sm:$0xff] }
 0x128   :  { %3709 = vmatpush3.bf16.msra.mxu0 %v3708_v56  ;;  %v3777_v56 = vpack.c.bf16 %v523_v54, %v522_v53  ;;  %v1157_v53 = vld [vmem:[%s5680_s3 + $0x318] sm:$0xff] }
 0x129   :  { %3733 = vmatpush3.bf16.msra.mxu1 %v3732_v57  ;;  %3710 = vmatprep.subr.bf16.mxu0 %v4089_v0  ;;  %v508_v57 = vld [vmem:[%s5680_s3 + $0x4b0] sm:$0xff] }
 0x12a   :  { %3734 = vmatprep.subr.bf16.mxu1 %v4089_v0  ;;  %v3756_v61 = vpack.c.bf16 %v509_v58, %v508_v57  ;;  %v1143_v57 = vld [vmem:[%s5680_s3 + $0x128] sm:$0xff]  ;;  %v1158_v58 = vld [vmem:[%s5680_s3 + $0x320] sm:$0xff] }
 0x12c   :  { %3712 = vmatpush3.bf16.msra.mxu0 %v3711_v62  ;;  %v3780_v62 = vpack.c.bf16 %v525_v60, %v524_v59  ;;  %v1159_v59 = vld [vmem:[%s5680_s3 + $0x328] sm:$0xff] }
 0x12d   :  { %3736 = vmatpush3.bf16.msra.mxu1 %v3735_v63  ;;  %3713 = vmatprep.subr.bf16.mxu0 %v4089_v0  ;;  %v510_v63 = vld [vmem:[%s5680_s3 + $0x4c0] sm:$0xff] }
 0x12e   :  { %3737 = vmatprep.subr.bf16.mxu1 %v4089_v0  ;;  %v3759_v4 = vpack.c.bf16 %v511_v1, %v510_v63  ;;  %v1145_v63 = vld [vmem:[%s5680_s3 + $0x138] sm:$0xff]  ;;  %v1160_v1 = vld [vmem:[%s5680_s3 + $0x330] sm:$0xff] }
 0x130   :  { %3715 = vmatpush3.bf16.msra.mxu0 %v3714_v5  ;;  %v3783_v5 = vpack.c.bf16 %v527_v3, %v526_v2  ;;  %v1161_v2 = vld [vmem:[%s5680_s3 + $0x338] sm:$0xff] }
 0x131   :  { %3739 = vmatpush3.bf16.msra.mxu1 %v3738_v6  ;;  %3716 = vmatprep.subr.bf16.mxu0 %v4089_v0  ;;  %v512_v6 = vld [vmem:[%s5680_s3 + $0x4d0] sm:$0xff] }
 0x132   :  { %3740 = vmatprep.subr.bf16.mxu1 %v4089_v0  ;;  %v3762_v11 = vpack.c.bf16 %v513_v7, %v512_v6  ;;  %v1147_v6 = vld [vmem:[%s5680_s3 + $0x148] sm:$0xff]  ;;  %v1162_v7 = vld [vmem:[%s5680_s3 + $0x340] sm:$0xff] }
 0x134   :  { %3718 = vmatpush3.bf16.msra.mxu0 %v3717_v12  ;;  %v3786_v12 = vpack.c.bf16 %v529_v10, %v528_v9  ;;  %v1163_v9 = vld [vmem:[%s5680_s3 + $0x348] sm:$0xff] }
 0x135   :  { %3742 = vmatpush3.bf16.msra.mxu1 %v3741_v13  ;;  %3719 = vmatprep.subr.bf16.mxu0 %v4089_v0  ;;  %v514_v13 = vld [vmem:[%s5680_s3 + $0x4e0] sm:$0xff] }
 0x136   :  { %3743 = vmatprep.subr.bf16.mxu1 %v4089_v0 }
 0x138   :  { %3721 = vmatpush3.bf16.msra.mxu0 %v3720_v17  ;;  %v3765_v17 = vpack.c.bf16 %v515_v14, %v514_v13  ;;  %v1149_v13 = vld [vmem:[%s5680_s3 + $0x158] sm:$0xff]  ;;  %v1164_v14 = vld [vmem:[%s5680_s3 + $0x350] sm:$0xff] }
 0x139   :  { %3745 = vmatpush3.bf16.msra.mxu1 %v3744_v19  ;;  %3746 = vmatprep.subr.bf16.mxu0 %v4089_v0  ;;  %v3789_v19 = vpack.c.bf16 %v531_v16, %v530_v15  ;;  %v1165_v15 = vld [vmem:[%s5680_s3 + $0x358] sm:$0xff] }
 0x13a   :  { %3770 = vmatprep.subr.bf16.mxu1 %v4089_v0 }
 0x1ce   :  { %v620_v30 = vpop.f32.mrb[4].mxu0 }
 0x1cf   :  { %v621_v35 = vadd.f32 %v620_v30, %v541_v25  ;;  %v690_v37 = vpop.f32.mrb[4].mxu1  ;;  %v2840_v38 = vpop.f32.mrb[5].mxu0  ;;  %v516_v25 = vld [vmem:[%s5680_s3 + $0x4f0] sm:$0xff]  ;;  %v549_v30 = vrot.slane %v4870_v18, %v4753_v22  ;;  %v1154_v22 = vld [vmem:[%s5680_s3 + $0x300] sm:$0xff] }
 0x1d0   :  { %v691_v39 = vadd.f32 %v690_v37, %v545_v26  ;;  %v2875_v40 = vpop.f32.mrb[5].mxu1  ;;  %v517_v26 = vld [vmem:[%s5680_s3 + $0x4f8] sm:$0xff]  ;;  %v1138_v37 = vld [vmem:[%s5680_s3 + $0x100] sm:$0xff]  ;;  %v1139_v38 = vld [vmem:[%s5680_s3 + $0x108] sm:$0xff] }
 0x1d1   :  { %v834_v42 = vmax.f32 %v621_v35, 0.0  ;;  %v3768_v34 = vpack.c.bf16 %v517_v26, %v516_v25  ;;  %v3792_v35 = vpack.c.bf16 %v533_v28, %v532_v27  ;;  %v1155_v40 = vld [vmem:[%s5680_s3 + $0x308] sm:$0xff]  ;;  %v1166_v26 = vld [vmem:[%s5680_s3 + $0x360] sm:$0xff] }
 0x1d2   :  { %v835_v46 = vmax.f32 %v691_v39, 0.0  ;;  %v3819_v48 = vpack.c.bf16 %v1155_v40, %v1154_v22  ;;  %v1151_v25 = vld [vmem:[%s5680_s3 + $0x168] sm:$0xff]  ;;  %v5016_v22 = vsub.s32 1, %v4750_v21 }
 0x1d3   :  { %2979 = vmatmul.mubr.f32.vlgmr.msra.gmra.mrb[8].mxu0 %v834_v42  ;;  %v1167_v28 = vld [vmem:[%s5680_s3 + $0x368] sm:$0xff] }
 0x1d4   :  { %3014 = vmatmul.mubr.f32.vlgmr.msra.gmra.mrb[8].mxu1 %v835_v46  ;;  %3748 = vmatpush3.bf16.msra.mxu0 %v3747_v41  ;;  %v3795_v46 = vpack.c.bf16 %v1139_v38, %v1138_v37  ;;  %v1169_v38 = vld [vmem:[%s5680_s3 + $0x378] sm:$0xff]  ;;  %v841_v40 = vrot.slane %v4758_v23, %v5016_v22 }
 0x1d5   :  { %3772 = vmatpush3.bf16.msra.mxu1 %v3771_v43  ;;  %3749 = vmatprep.subr.bf16.mxu0 %v4089_v0 }
 0x1d6   :  { %3773 = vmatprep.subr.bf16.mxu1 %v4089_v0  ;;  %3048 = vmatprep.mubr.msk.f32.mxu0 %vm4090_vm0, %v4091_v8 }
 0x1d7   :  { %3083 = vmatprep.mubr.msk.f32.mxu1 %vm4090_vm0, %v4091_v8 }
 0x1d8   :  { %3751 = vmatpush3.bf16.msra.mxu0 %v3750_v49  ;;  %v1140_v49 = vld [vmem:[%s5680_s3 + $0x110] sm:$0xff] }
 0x1d9   :  { %3775 = vmatpush3.bf16.msra.mxu1 %v3774_v50  ;;  %3752 = vmatprep.subr.bf16.mxu0 %v4089_v0  ;;  %v1141_v50 = vld [vmem:[%s5680_s3 + $0x118] sm:$0xff] }
 0x1da   :  { %3776 = vmatprep.subr.bf16.mxu1 %v4089_v0  ;;  %v3798_v54 = vpack.c.bf16 %v1141_v50, %v1140_v49  ;;  %v1186_v50 = vld [vmem:[%s5680_s3 + $0x700] sm:$0xff] }
 0x1dc   :  { %3754 = vmatpush3.bf16.msra.mxu0 %v3753_v55  ;;  %v3822_v55 = vpack.c.bf16 %v1157_v53, %v1156_v52 }
 0x1dd   :  { %3778 = vmatpush3.bf16.msra.mxu1 %v3777_v56  ;;  %3755 = vmatprep.subr.bf16.mxu0 %v4089_v0  ;;  %v1142_v56 = vld [vmem:[%s5680_s3 + $0x120] sm:$0xff] }
 0x1de   :  { %3779 = vmatprep.subr.bf16.mxu1 %v4089_v0  ;;  %v3801_v60 = vpack.c.bf16 %v1143_v57, %v1142_v56  ;;  %v1172_v57 = vld [vmem:[%s5680_s3 + $0x510] sm:$0xff] }
 0x1e0   :  { %3757 = vmatpush3.bf16.msra.mxu0 %v3756_v61  ;;  %v3825_v61 = vpack.c.bf16 %v1159_v59, %v1158_v58  ;;  %v1173_v58 = vld [vmem:[%s5680_s3 + $0x518] sm:$0xff] }
 0x1e1   :  { %3781 = vmatpush3.bf16.msra.mxu1 %v3780_v62  ;;  %3758 = vmatprep.subr.bf16.mxu0 %v4089_v0  ;;  %v1144_v62 = vld [vmem:[%s5680_s3 + $0x130] sm:$0xff] }
 0x1e2   :  { %3782 = vmatprep.subr.bf16.mxu1 %v4089_v0  ;;  %v3804_v3 = vpack.c.bf16 %v1145_v63, %v1144_v62  ;;  %v1174_v62 = vld [vmem:[%s5680_s3 + $0x520] sm:$0xff]  ;;  %v1175_v63 = vld [vmem:[%s5680_s3 + $0x528] sm:$0xff] }
 0x1e4   :  { %3760 = vmatpush3.bf16.msra.mxu0 %v3759_v4  ;;  %v3828_v4 = vpack.c.bf16 %v1161_v2, %v1160_v1  ;;  %v1190_v1 = vld [vmem:[%s5680_s3 + $0x720] sm:$0xff]  ;;  %v1191_v2 = vld [vmem:[%s5680_s3 + $0x728] sm:$0xff] }
 0x1e5   :  { %3784 = vmatpush3.bf16.msra.mxu1 %v3783_v5  ;;  %3761 = vmatprep.subr.bf16.mxu0 %v4089_v0  ;;  %v1146_v5 = vld [vmem:[%s5680_s3 + $0x140] sm:$0xff] }
 0x1e6   :  { %3785 = vmatprep.subr.bf16.mxu1 %v4089_v0  ;;  %v3807_v10 = vpack.c.bf16 %v1147_v6, %v1146_v5  ;;  %v1176_v5 = vld [vmem:[%s5680_s3 + $0x530] sm:$0xff]  ;;  %v1177_v6 = vld [vmem:[%s5680_s3 + $0x538] sm:$0xff] }
 0x1e8   :  { %3763 = vmatpush3.bf16.msra.mxu0 %v3762_v11  ;;  %v3831_v11 = vpack.c.bf16 %v1163_v9, %v1162_v7  ;;  %v1192_v7 = vld [vmem:[%s5680_s3 + $0x730] sm:$0xff]  ;;  %v1193_v9 = vld [vmem:[%s5680_s3 + $0x738] sm:$0xff] }
 0x1e9   :  { %3787 = vmatpush3.bf16.msra.mxu1 %v3786_v12  ;;  %3764 = vmatprep.subr.bf16.mxu0 %v4089_v0  ;;  %v1148_v12 = vld [vmem:[%s5680_s3 + $0x150] sm:$0xff] }
 0x1ea   :  { %3788 = vmatprep.subr.bf16.mxu1 %v4089_v0  ;;  %v3810_v16 = vpack.c.bf16 %v1149_v13, %v1148_v12  ;;  %v1178_v12 = vld [vmem:[%s5680_s3 + $0x540] sm:$0xff]  ;;  %v1179_v13 = vld [vmem:[%s5680_s3 + $0x548] sm:$0xff] }
 0x1ec   :  { %3766 = vmatpush3.bf16.msra.mxu0 %v3765_v17  ;;  %v3834_v17 = vpack.c.bf16 %v1165_v15, %v1164_v14  ;;  %v1194_v14 = vld [vmem:[%s5680_s3 + $0x740] sm:$0xff]  ;;  %v1195_v15 = vld [vmem:[%s5680_s3 + $0x748] sm:$0xff] }
 0x1ed   :  { %3790 = vmatpush3.bf16.msra.mxu1 %v3789_v19  ;;  %3767 = vmatprep.subr.bf16.mxu0 %v4089_v0  ;;  %v1150_v19 = vld [vmem:[%s5680_s3 + $0x160] sm:$0xff] }
 0x1ee   :  { %v760_v39 = vpop.f32.mrb[6].mxu0  ;;  %3791 = vmatprep.subr.bf16.mxu1 %v4089_v0  ;;  %v3813_v27 = vpack.c.bf16 %v1151_v25, %v1150_v19  ;;  %v1180_v19 = vld [vmem:[%s5680_s3 + $0x550] sm:$0xff]  ;;  %v1181_v25 = vld [vmem:[%s5680_s3 + $0x558] sm:$0xff] }
 0x1ef   :  { %v761_v41 = vadd.f32 %v760_v39, %v549_v30  ;;  %v830_v42 = vpop.f32.mrb[6].mxu1  ;;  %v2910_v43 = vpop.f32.mrb[7].mxu0  ;;  %v3837_v30 = vpack.c.bf16 %v1167_v28, %v1166_v26  ;;  %v1196_v26 = vld [vmem:[%s5680_s3 + $0x750] sm:$0xff]  ;;  %v3858_v28 = vpack.c.bf16 %v1181_v25, %v1180_v19  ;;  %v1211_v19 = vld [vmem:[%s5680_s3 + $0x1c8] sm:$0xff]  ;;  %v1226_v25 = vld [vmem:[%s5680_s3 + $0x3c0] sm:$0xff] }
 0x1f0   :  { %v831_v44 = vadd.f32 %v830_v42, %v553_v31  ;;  %v2945_v45 = vpop.f32.mrb[7].mxu1  ;;  %3769 = vmatpush3.bf16.msra.mxu0 %v3768_v34  ;;  %v1152_v31 = vld [vmem:[%s5680_s3 + $0x170] sm:$0xff]  ;;  %v1153_v34 = vld [vmem:[%s5680_s3 + $0x178] sm:$0xff] }
 0x1f1   :  { %v836_v47 = vmax.f32 %v761_v41, 0.0  ;;  %3793 = vmatpush3.bf16.msra.mxu1 %v3792_v35  ;;  %3794 = vmatprep.subr.bf16.mxu0 %v4089_v0  ;;  %v1168_v35 = vld [vmem:[%s5680_s3 + $0x370] sm:$0xff]  ;;  %v3816_v37 = vpack.c.bf16 %v1153_v34, %v1152_v31  ;;  %v845_v41 = vrot.slane %v4763_v24, %v5016_v22  ;;  %v1182_v31 = vld [vmem:[%s5680_s3 + $0x560] sm:$0xff]  ;;  %v1183_v34 = vld [vmem:[%s5680_s3 + $0x568] sm:$0xff] }
 0x1f2   :  { %v837_v51 = vmax.f32 %v831_v44, 0.0  ;;  %3818 = vmatprep.subr.bf16.mxu1 %v4089_v0  ;;  %v3840_v39 = vpack.c.bf16 %v1169_v38, %v1168_v35  ;;  %v1198_v35 = vld [vmem:[%s5680_s3 + $0x760] sm:$0xff]  ;;  %v3861_v38 = vpack.c.bf16 %v1183_v34, %v1182_v31  ;;  %v1213_v31 = vld [vmem:[%s5680_s3 + $0x1d8] sm:$0xff]  ;;  %v1228_v34 = vld [vmem:[%s5680_s3 + $0x3d0] sm:$0xff] }
 0x1f3   :  { %3049 = vmatmul.mubr.f32.vlgmr.msra.gmra.mrb[10].mxu0 %v836_v47  ;;  %v1171_v47 = vld [vmem:[%s5680_s3 + $0x508] sm:$0xff] }
 0x1f4   :  { %3084 = vmatmul.mubr.f32.vlgmr.msra.gmra.mrb[10].mxu1 %v837_v51  ;;  %3796 = vmatpush3.bf16.msra.mxu0 %v3795_v46  ;;  %v1170_v46 = vld [vmem:[%s5680_s3 + $0x500] sm:$0xff]  ;;  %v1187_v51 = vld [vmem:[%s5680_s3 + $0x708] sm:$0xff] }
 0x1f5   :  { %3820 = vmatpush3.bf16.msra.mxu1 %v3819_v48  ;;  %3797 = vmatprep.subr.bf16.mxu0 %v4089_v0  ;;  %v3867_v56 = vpack.c.bf16 %v1187_v51, %v1186_v50 }
 0x1f6   :  { %3821 = vmatprep.subr.bf16.mxu1 %v4089_v0  ;;  %3118 = vmatprep.mubr.msk.f32.mxu0 %vm4090_vm0, %v4091_v8 }
 0x1f7   :  { %3153 = vmatprep.mubr.msk.f32.mxu1 %vm4090_vm0, %v4091_v8 }
 0x1f8   :  { %3799 = vmatpush3.bf16.msra.mxu0 %v3798_v54  ;;  %v3843_v54 = vpack.c.bf16 %v1171_v47, %v1170_v46 }
 0x1f9   :  { %3823 = vmatpush3.bf16.msra.mxu1 %v3822_v55  ;;  %3800 = vmatprep.subr.bf16.mxu0 %v4089_v0 }
 0x1fa   :  { %3824 = vmatprep.subr.bf16.mxu1 %v4089_v0 }
 0x1fc   :  { %3802 = vmatpush3.bf16.msra.mxu0 %v3801_v60  ;;  %v3846_v60 = vpack.c.bf16 %v1173_v58, %v1172_v57  ;;  %v1218_v57 = vld [vmem:[%s5680_s3 + $0x380] sm:$0xff]  ;;  %v1219_v58 = vld [vmem:[%s5680_s3 + $0x388] sm:$0xff] }
 0x1fd   :  { %3826 = vmatpush3.bf16.msra.mxu1 %v3825_v61  ;;  %3803 = vmatprep.subr.bf16.mxu0 %v4089_v0 }
 0x1fe   :  { %3827 = vmatprep.subr.bf16.mxu1 %v4089_v0 }
 0x200   :  { %3805 = vmatpush3.bf16.msra.mxu0 %v3804_v3  ;;  %v3849_v3 = vpack.c.bf16 %v1175_v63, %v1174_v62  ;;  %v1204_v62 = vld [vmem:[%s5680_s3 + $0x190] sm:$0xff] }
 0x201   :  { %3829 = vmatpush3.bf16.msra.mxu1 %v3828_v4  ;;  %3806 = vmatprep.subr.bf16.mxu0 %v4089_v0  ;;  %v3873_v4 = vpack.c.bf16 %v1191_v2, %v1190_v1  ;;  %v1221_v1 = vld [vmem:[%s5680_s3 + $0x398] sm:$0xff] }
 0x202   :  { %3830 = vmatprep.subr.bf16.mxu1 %v4089_v0 }
 0x204   :  { %3808 = vmatpush3.bf16.msra.mxu0 %v3807_v10  ;;  %v3852_v10 = vpack.c.bf16 %v1177_v6, %v1176_v5  ;;  %v1207_v5 = vld [vmem:[%s5680_s3 + $0x1a8] sm:$0xff]  ;;  %v1222_v6 = vld [vmem:[%s5680_s3 + $0x3a0] sm:$0xff] }
 0x205   :  { %3832 = vmatpush3.bf16.msra.mxu1 %v3831_v11  ;;  %3809 = vmatprep.subr.bf16.mxu0 %v4089_v0  ;;  %v3876_v11 = vpack.c.bf16 %v1193_v9, %v1192_v7  ;;  %v1223_v7 = vld [vmem:[%s5680_s3 + $0x3a8] sm:$0xff] }
 0x206   :  { %3833 = vmatprep.subr.bf16.mxu1 %v4089_v0 }
 0x208   :  { %3811 = vmatpush3.bf16.msra.mxu0 %v3810_v16  ;;  %v3855_v16 = vpack.c.bf16 %v1179_v13, %v1178_v12  ;;  %v1209_v12 = vld [vmem:[%s5680_s3 + $0x1b8] sm:$0xff]  ;;  %v1224_v13 = vld [vmem:[%s5680_s3 + $0x3b0] sm:$0xff] }
 0x209   :  { %3835 = vmatpush3.bf16.msra.mxu1 %v3834_v17  ;;  %3812 = vmatprep.subr.bf16.mxu0 %v4089_v0  ;;  %v3879_v17 = vpack.c.bf16 %v1195_v15, %v1194_v14  ;;  %v1225_v14 = vld [vmem:[%s5680_s3 + $0x3b8] sm:$0xff] }
 0x20a   :  { %3836 = vmatprep.subr.bf16.mxu1 %v4089_v0 }
 0x20c   :  { %3814 = vmatpush3.bf16.msra.mxu0 %v3813_v27  ;;  %v1197_v27 = vld [vmem:[%s5680_s3 + $0x758] sm:$0xff] }
 0x20d   :  { %3838 = vmatpush3.bf16.msra.mxu1 %v3837_v30  ;;  %3815 = vmatprep.subr.bf16.mxu0 %v4089_v0  ;;  %v3882_v30 = vpack.c.bf16 %v1197_v27, %v1196_v26  ;;  %v1227_v26 = vld [vmem:[%s5680_s3 + $0x3c8] sm:$0xff] }
 0x20e   :  { %3839 = vmatprep.subr.bf16.mxu1 %v4089_v0 }
 0x210   :  { %3817 = vmatpush3.bf16.msra.mxu0 %v3816_v37  ;;  %v1199_v37 = vld [vmem:[%s5680_s3 + $0x768] sm:$0xff] }
 0x211   :  { %3841 = vmatpush3.bf16.msra.mxu1 %v3840_v39  ;;  %3842 = vmatprep.subr.bf16.mxu0 %v4089_v0  ;;  %v849_v39 = vrot.slane %v4870_v18, %v5016_v22 }
 0x212   :  { %3866 = vmatprep.subr.bf16.mxu1 %v4089_v0 }
 0x2a6   :  { %v920_v42 = vpop.f32.mrb[8].mxu0 }
 0x2a7   :  { %v921_v43 = vadd.f32 %v920_v42, %v841_v40  ;;  %v990_v44 = vpop.f32.mrb[8].mxu1  ;;  %v2980_v45 = vpop.f32.mrb[9].mxu0  ;;  %v3885_v40 = vpack.c.bf16 %v1199_v37, %v1198_v35  ;;  %v1185_v42 = vld [vmem:[%s5680_s3 + $0x578] sm:$0xff] }
 0x2a8   :  { %v991_v48 = vadd.f32 %v990_v44, %v845_v41  ;;  %v3015_v49 = vpop.f32.mrb[9].mxu1  ;;  %v1184_v41 = vld [vmem:[%s5680_s3 + $0x570] sm:$0xff]  ;;  %v1201_v45 = vld [vmem:[%s5680_s3 + $0x778] sm:$0xff] }
 0x2a9   :  { %v5035_v52 = vadd.f32 %v921_v43, %v4512_v33  ;;  %v1188_v33 = vld [vmem:[%s5680_s3 + $0x710] sm:$0xff]  ;;  %v853_v43 = vrot.slane %v4876_v20, %v5016_v22  ;;  %v3864_v47 = vpack.c.bf16 %v1185_v42, %v1184_v41  ;;  %v1202_v22 = vld [vmem:[%s5680_s3 + $0x180] sm:$0xff]  ;;  %v1229_v35 = vld [vmem:[%s5680_s3 + $0x3d8] sm:$0xff] }
 0x2aa   :  { %v5038_v53 = vadd.f32 %v991_v48, %v4514_v36  ;;  %v1189_v36 = vld [vmem:[%s5680_s3 + $0x718] sm:$0xff]  ;;  %v1200_v44 = vld [vmem:[%s5680_s3 + $0x770] sm:$0xff]  ;;  %v1230_v41 = vld [vmem:[%s5680_s3 + $0x3e0] sm:$0xff] }
 0x2ab   :  { %v1266_v55 = vmax.f32 %v5035_v52, 0.0  ;;  %v3870_v61 = vpack.c.bf16 %v1189_v36, %v1188_v33  ;;  %v3888_v51 = vpack.c.bf16 %v1201_v45, %v1200_v44  ;;  %v1231_v42 = vld [vmem:[%s5680_s3 + $0x3e8] sm:$0xff]  ;;  %v1216_v45 = vld [vmem:[%s5680_s3 + $0x1f0] sm:$0xff] }
 0x2ac   :  { %v1267_v59 = vmax.f32 %v5038_v53, 0.0  ;;  %v3933_v44 = vpack.c.bf16 %v1231_v42, %v1230_v41 }
 0x2ad   :  { %3119 = vmatmul.mubr.f32.vlgmr.msra.gmra.mrb[12].mxu0 %v1266_v55 }
 0x2ae   :  { %3154 = vmatmul.mubr.f32.vlgmr.msra.gmra.mrb[12].mxu1 %v1267_v59  ;;  %3844 = vmatpush3.bf16.msra.mxu0 %v3843_v54  ;;  %v1203_v54 = vld [vmem:[%s5680_s3 + $0x188] sm:$0xff] }
 0x2af   :  { %3868 = vmatpush3.bf16.msra.mxu1 %v3867_v56  ;;  %3845 = vmatprep.subr.bf16.mxu0 %v4089_v0  ;;  %v3891_v36 = vpack.c.bf16 %v1203_v54, %v1202_v22 }
 0x2b0   :  { %3869 = vmatprep.subr.bf16.mxu1 %v4089_v0  ;;  %3188 = vmatprep.mubr.msk.f32.mxu0 %vm4090_vm0, %v4091_v8 }
 0x2b1   :  { %3223 = vmatprep.mubr.msk.f32.mxu1 %vm4090_vm0, %v4091_v8 }
 0x2b2   :  { %3847 = vmatpush3.bf16.msra.mxu0 %v3846_v60 }
 0x2b3   :  { %3871 = vmatpush3.bf16.msra.mxu1 %v3870_v61  ;;  %3848 = vmatprep.subr.bf16.mxu0 %v4089_v0  ;;  %v3915_v61 = vpack.c.bf16 %v1219_v58, %v1218_v57  ;;  %v1250_v58 = vld [vmem:[%s5680_s3 + $0x780] sm:$0xff] }
 0x2b4   :  { %3872 = vmatprep.subr.bf16.mxu1 %v4089_v0 }
 0x2b6   :  { %3850 = vmatpush3.bf16.msra.mxu0 %v3849_v3 }
 0x2b7   :  { %3874 = vmatpush3.bf16.msra.mxu1 %v3873_v4  ;;  %3851 = vmatprep.subr.bf16.mxu0 %v4089_v0  ;;  %v1206_v4 = vld [vmem:[%s5680_s3 + $0x1a0] sm:$0xff] }
 0x2b8   :  { %3875 = vmatprep.subr.bf16.mxu1 %v4089_v0  ;;  %v3897_v9 = vpack.c.bf16 %v1207_v5, %v1206_v4  ;;  %v1252_v4 = vld [vmem:[%s5680_s3 + $0x790] sm:$0xff]  ;;  %v1253_v5 = vld [vmem:[%s5680_s3 + $0x798] sm:$0xff] }
 0x2ba   :  { %3853 = vmatpush3.bf16.msra.mxu0 %v3852_v10  ;;  %v3921_v10 = vpack.c.bf16 %v1223_v7, %v1222_v6  ;;  %v3966_v7 = vpack.c.bf16 %v1253_v5, %v1252_v4  ;;  %v1888_v5 = vld [vmem:[%s5683_s5 + $0x90] sm:$0xff] }
 0x2bb   :  { %3877 = vmatpush3.bf16.msra.mxu1 %v3876_v11  ;;  %3854 = vmatprep.subr.bf16.mxu0 %v4089_v0  ;;  %v1208_v11 = vld [vmem:[%s5680_s3 + $0x1b0] sm:$0xff] }
 0x2bc   :  { %3878 = vmatprep.subr.bf16.mxu1 %v4089_v0  ;;  %v3900_v15 = vpack.c.bf16 %v1209_v12, %v1208_v11  ;;  %v1254_v11 = vld [vmem:[%s5680_s3 + $0x7a0] sm:$0xff]  ;;  %v1255_v12 = vld [vmem:[%s5680_s3 + $0x7a8] sm:$0xff] }
 0x2be   :  { %3856 = vmatpush3.bf16.msra.mxu0 %v3855_v16  ;;  %v3924_v16 = vpack.c.bf16 %v1225_v14, %v1224_v13  ;;  %v3969_v14 = vpack.c.bf16 %v1255_v12, %v1254_v11  ;;  %v1875_v11 = vld [vmem:[%s5683_s5 + $0x28] sm:$0xff]  ;;  %v1890_v12 = vld [vmem:[%s5683_s5 + $0xa0] sm:$0xff] }
 0x2bf   :  { %3880 = vmatpush3.bf16.msra.mxu1 %v3879_v17  ;;  %3857 = vmatprep.subr.bf16.mxu0 %v4089_v0  ;;  %v1210_v17 = vld [vmem:[%s5680_s3 + $0x1c0] sm:$0xff] }
 0x2c0   :  { %3881 = vmatprep.subr.bf16.mxu1 %v4089_v0  ;;  %v3903_v27 = vpack.c.bf16 %v1211_v19, %v1210_v17  ;;  %v1256_v17 = vld [vmem:[%s5680_s3 + $0x7b0] sm:$0xff]  ;;  %v1257_v19 = vld [vmem:[%s5680_s3 + $0x7b8] sm:$0xff] }
 0x2c2   :  { %3859 = vmatpush3.bf16.msra.mxu0 %v3858_v28  ;;  %v3927_v28 = vpack.c.bf16 %v1227_v26, %v1226_v25  ;;  %v3972_v26 = vpack.c.bf16 %v1257_v19, %v1256_v17  ;;  %v1877_v17 = vld [vmem:[%s5683_s5 + $0x38] sm:$0xff]  ;;  %v1892_v19 = vld [vmem:[%s5683_s5 + $0xb0] sm:$0xff] }
 0x2c3   :  { %3883 = vmatpush3.bf16.msra.mxu1 %v3882_v30  ;;  %3860 = vmatprep.subr.bf16.mxu0 %v4089_v0  ;;  %v1212_v30 = vld [vmem:[%s5680_s3 + $0x1d0] sm:$0xff] }
 0x2c4   :  { %3884 = vmatprep.subr.bf16.mxu1 %v4089_v0  ;;  %v3906_v37 = vpack.c.bf16 %v1213_v31, %v1212_v30  ;;  %v1258_v30 = vld [vmem:[%s5680_s3 + $0x7c0] sm:$0xff]  ;;  %v1259_v31 = vld [vmem:[%s5680_s3 + $0x7c8] sm:$0xff] }
 0x2c6   :  { %v1060_v46 = vpop.f32.mrb[10].mxu0  ;;  %3862 = vmatpush3.bf16.msra.mxu0 %v3861_v38  ;;  %v3930_v38 = vpack.c.bf16 %v1229_v35, %v1228_v34  ;;  %v3975_v35 = vpack.c.bf16 %v1259_v31, %v1258_v30  ;;  %v1879_v30 = vld [vmem:[%s5683_s5 + $0x48] sm:$0xff]  ;;  %v1894_v31 = vld [vmem:[%s5683_s5 + $0xc0] sm:$0xff] }
 0x2c7   :  { %v1061_v48 = vadd.f32 %v1060_v46, %v849_v39  ;;  %v1130_v49 = vpop.f32.mrb[10].mxu1  ;;  %3886 = vmatpush3.bf16.msra.mxu1 %v3885_v40  ;;  %v3050_v50 = vpop.f32.mrb[11].mxu0  ;;  %3863 = vmatprep.subr.bf16.mxu0 %v4089_v0  ;;  %v1214_v39 = vld [vmem:[%s5680_s3 + $0x1e0] sm:$0xff]  ;;  %v1215_v40 = vld [vmem:[%s5680_s3 + $0x1e8] sm:$0xff]  ;;  %v1217_v46 = vld [vmem:[%s5680_s3 + $0x1f8] sm:$0xff] }
 0x2c8   :  { %v1131_v55 = vadd.f32 %v1130_v49, %v853_v43  ;;  %v3085_v56 = vpop.f32.mrb[11].mxu1  ;;  %3887 = vmatprep.subr.bf16.mxu1 %v4089_v0  ;;  %v3909_v43 = vpack.c.bf16 %v1215_v40, %v1214_v39  ;;  %v1233_v49 = vld [vmem:[%s5680_s3 + $0x3f8] sm:$0xff]  ;;  %v1260_v39 = vld [vmem:[%s5680_s3 + $0x7d0] sm:$0xff] }
 0x2c9   :  { %v5161_v59 = vadd.f32 %v1061_v48, %v4638_v29  ;;  %v1205_v29 = vld [vmem:[%s5680_s3 + $0x198] sm:$0xff]  ;;  %v3912_v48 = vpack.c.bf16 %v1217_v46, %v1216_v45  ;;  %v1235_v56 = vld [vmem:[%s5680_s3 + $0x588] sm:$0xff]  ;;  %v1262_v45 = vld [vmem:[%s5680_s3 + $0x7e0] sm:$0xff] }
 0x2ca   :  { %v5164_v33 = vadd.f32 %v1131_v55, %v4640_v32  ;;  %3865 = vmatpush3.bf16.msra.mxu0 %v3864_v47  ;;  %v1220_v32 = vld [vmem:[%s5680_s3 + $0x390] sm:$0xff]  ;;  %v3894_v2 = vpack.c.bf16 %v1205_v29, %v1204_v62  ;;  %v1234_v55 = vld [vmem:[%s5680_s3 + $0x580] sm:$0xff]  ;;  %v1261_v40 = vld [vmem:[%s5680_s3 + $0x7d8] sm:$0xff] }
 0x2cb   :  { %v1268_v60 = vmax.f32 %v5161_v59, 0.0  ;;  %3889 = vmatpush3.bf16.msra.mxu1 %v3888_v51  ;;  %3890 = vmatprep.subr.bf16.mxu0 %v4089_v0  ;;  %v3918_v3 = vpack.c.bf16 %v1221_v1, %v1220_v32  ;;  %v1232_v47 = vld [vmem:[%s5680_s3 + $0x3f0] sm:$0xff]  ;;  %v5275_v51 = vsub.s32 2, %v4750_v21  ;;  %v3939_v29 = vpack.c.bf16 %v1235_v56, %v1234_v55  ;;  %v1263_v46 = vld [vmem:[%s5680_s3 + $0x7e8] sm:$0xff] }
 0x2cc   :  { %v1269_v63 = vmax.f32 %v5164_v33, 0.0  ;;  %3914 = vmatprep.subr.bf16.mxu1 %v4089_v0  ;;  %v3936_v50 = vpack.c.bf16 %v1233_v49, %v1232_v47  ;;  %v1236_v1 = vld [vmem:[%s5680_s3 + $0x590] sm:$0xff]  ;;  %v3978_v42 = vpack.c.bf16 %v1261_v40, %v1260_v39  ;;  %v1881_v39 = vld [vmem:[%s5683_s5 + $0x58] sm:$0xff] }
 0x2cd   :  { %3189 = vmatmul.mubr.f32.vlgmr.msra.gmra.mrb[14].mxu0 %v1268_v60  ;;  %v1273_v22 = vrot.slane %v4758_v23, %v5275_v51  ;;  %v1277_v54 = vrot.slane %v4763_v24, %v5275_v51  ;;  %v1251_v23 = vld [vmem:[%s5680_s3 + $0x788] sm:$0xff]  ;;  %v1248_v49 = vld [vmem:[%s5680_s3 + $0x5f0] sm:$0xff]  ;;  %v1281_v55 = vrot.slane %v4870_v18, %v5275_v51  ;;  %v1285_v56 = vrot.slane %v4876_v20, %v5275_v51  ;;  %v1886_v18 = vld [vmem:[%s5683_s5 + $0x80] sm:$0xff] }
 0x2ce   :  { %3224 = vmatmul.mubr.f32.vlgmr.msra.gmra.mrb[14].mxu1 %v1269_v63  ;;  %3892 = vmatpush3.bf16.msra.mxu0 %v3891_v36  ;;  %v3963_v32 = vpack.c.bf16 %v1251_v23, %v1250_v58  ;;  %v1870_v23 = vld [vmem:[%s5683_s5] sm:$0xff]  ;;  %v1887_v20 = vld [vmem:[%s5683_s5 + $0x88] sm:$0xff]  ;;  %v1896_v40 = vld [vmem:[%s5683_s5 + $0xd0] sm:$0xff] }
 0x2cf   :  { %3916 = vmatpush3.bf16.msra.mxu1 %v3915_v61  ;;  %3893 = vmatprep.subr.bf16.mxu0 %v4089_v0 }
 0x2d0   :  { %3917 = vmatprep.subr.bf16.mxu1 %v4089_v0  ;;  %3258 = vmatprep.mubr.msk.f32.mxu0 %vm4090_vm0, %v4091_v8 }
 0x2d1   :  { %3293 = vmatprep.mubr.msk.f32.mxu1 %vm4090_vm0, %v4091_v8 }
 0x2d2   :  { %3895 = vmatpush3.bf16.msra.mxu0 %v3894_v2  ;;  %v1237_v2 = vld [vmem:[%s5680_s3 + $0x598] sm:$0xff] }
 0x2d3   :  { %3919 = vmatpush3.bf16.msra.mxu1 %v3918_v3  ;;  %3896 = vmatprep.subr.bf16.mxu0 %v4089_v0  ;;  %v3942_v6 = vpack.c.bf16 %v1237_v2, %v1236_v1  ;;  %v4011_v1 = vpack.c.bf16 %v1887_v20, %v1886_v18  ;;  %v1872_v2 = vld [vmem:[%s5683_s5 + $0x10] sm:$0xff]  ;;  %v1902_v20 = vld [vmem:[%s5683_s5 + $0x100] sm:$0xff] }
 0x2d4   :  { %3920 = vmatprep.subr.bf16.mxu1 %v4089_v0 }
 0x2d6   :  { %3898 = vmatpush3.bf16.msra.mxu0 %v3897_v9  ;;  %v1238_v9 = vld [vmem:[%s5680_s3 + $0x5a0] sm:$0xff] }
 0x2d7   :  { %3922 = vmatpush3.bf16.msra.mxu1 %v3921_v10  ;;  %3899 = vmatprep.subr.bf16.mxu0 %v4089_v0  ;;  %v1239_v10 = vld [vmem:[%s5680_s3 + $0x5a8] sm:$0xff] }
 0x2d8   :  { %3923 = vmatprep.subr.bf16.mxu1 %v4089_v0  ;;  %v3945_v13 = vpack.c.bf16 %v1239_v10, %v1238_v9  ;;  %v1874_v10 = vld [vmem:[%s5683_s5 + $0x20] sm:$0xff] }
 0x2da   :  { %3901 = vmatpush3.bf16.msra.mxu0 %v3900_v15  ;;  %v1240_v15 = vld [vmem:[%s5680_s3 + $0x5b0] sm:$0xff] }
 0x2db   :  { %3925 = vmatpush3.bf16.msra.mxu1 %v3924_v16  ;;  %3902 = vmatprep.subr.bf16.mxu0 %v4089_v0  ;;  %v1241_v16 = vld [vmem:[%s5680_s3 + $0x5b8] sm:$0xff] }
 0x2dc   :  { %3926 = vmatprep.subr.bf16.mxu1 %v4089_v0  ;;  %v3948_v25 = vpack.c.bf16 %v1241_v16, %v1240_v15  ;;  %v1876_v16 = vld [vmem:[%s5683_s5 + $0x30] sm:$0xff] }
 0x2de   :  { %3904 = vmatpush3.bf16.msra.mxu0 %v3903_v27  ;;  %v1242_v27 = vld [vmem:[%s5680_s3 + $0x5c0] sm:$0xff] }
 0x2df   :  { %3928 = vmatpush3.bf16.msra.mxu1 %v3927_v28  ;;  %3905 = vmatprep.subr.bf16.mxu0 %v4089_v0  ;;  %v1243_v28 = vld [vmem:[%s5680_s3 + $0x5c8] sm:$0xff] }
 0x2e0   :  { %3929 = vmatprep.subr.bf16.mxu1 %v4089_v0  ;;  %v3951_v34 = vpack.c.bf16 %v1243_v28, %v1242_v27  ;;  %v1878_v28 = vld [vmem:[%s5683_s5 + $0x40] sm:$0xff] }
 0x2e2   :  { %3907 = vmatpush3.bf16.msra.mxu0 %v3906_v37  ;;  %v1244_v37 = vld [vmem:[%s5680_s3 + $0x5d0] sm:$0xff] }
 0x2e3   :  { %3931 = vmatpush3.bf16.msra.mxu1 %v3930_v38  ;;  %3908 = vmatprep.subr.bf16.mxu0 %v4089_v0  ;;  %v1245_v38 = vld [vmem:[%s5680_s3 + $0x5d8] sm:$0xff] }
 0x2e4   :  { %3932 = vmatprep.subr.bf16.mxu1 %v4089_v0  ;;  %v3954_v41 = vpack.c.bf16 %v1245_v38, %v1244_v37  ;;  %v1880_v38 = vld [vmem:[%s5683_s5 + $0x50] sm:$0xff] }
 0x2e6   :  { %3910 = vmatpush3.bf16.msra.mxu0 %v3909_v43  ;;  %v1246_v43 = vld [vmem:[%s5680_s3 + $0x5e0] sm:$0xff] }
 0x2e7   :  { %3934 = vmatpush3.bf16.msra.mxu1 %v3933_v44  ;;  %3911 = vmatprep.subr.bf16.mxu0 %v4089_v0  ;;  %v1247_v44 = vld [vmem:[%s5680_s3 + $0x5e8] sm:$0xff] }
 0x2e8   :  { %3935 = vmatprep.subr.bf16.mxu1 %v4089_v0  ;;  %v3957_v47 = vpack.c.bf16 %v1247_v44, %v1246_v43  ;;  %v1882_v44 = vld [vmem:[%s5683_s5 + $0x60] sm:$0xff] }
 0x2ea   :  { %3913 = vmatpush3.bf16.msra.mxu0 %v3912_v48  ;;  %v3981_v48 = vpack.c.bf16 %v1263_v46, %v1262_v45  ;;  %v1883_v45 = vld [vmem:[%s5683_s5 + $0x68] sm:$0xff]  ;;  %v1898_v46 = vld [vmem:[%s5683_s5 + $0xe0] sm:$0xff] }
 0x2eb   :  { %3937 = vmatpush3.bf16.msra.mxu1 %v3936_v50  ;;  %3938 = vmatprep.subr.bf16.mxu0 %v4089_v0  ;;  %v1249_v50 = vld [vmem:[%s5680_s3 + $0x5f8] sm:$0xff] }
 0x2ec   :  { %3962 = vmatprep.subr.bf16.mxu1 %v4089_v0 }
 0x380   :  { %v1352_v57 = vpop.f32.mrb[12].mxu0 }
 0x381   :  { %v1353_v36 = vadd.f32 %v1352_v57, %v1273_v22  ;;  %v1422_v60 = vpop.f32.mrb[12].mxu1  ;;  %v3120_v24 = vpop.f32.mrb[13].mxu0  ;;  %v1264_v22 = vld [vmem:[%s5680_s3 + $0x7f0] sm:$0xff]  ;;  %v3960_v57 = vpack.c.bf16 %v1249_v50, %v1248_v49 }
 0x382   :  { %v1423_v61 = vadd.f32 %v1422_v60, %v1277_v54  ;;  %v3155_v62 = vpop.f32.mrb[13].mxu1  ;;  %v1265_v54 = vld [vmem:[%s5680_s3 + $0x7f8] sm:$0xff]  ;;  %v1884_v50 = vld [vmem:[%s5683_s5 + $0x70] sm:$0xff] }
 0x383   :  { %v1566_v63 = vmax.f32 %v1353_v36, 0.0  ;;  %v3984_v58 = vpack.c.bf16 %v1265_v54, %v1264_v22  ;;  %v1871_v36 = vld [vmem:[%s5683_s5 + $0x8] sm:$0xff]  ;;  %v1885_v22 = vld [vmem:[%s5683_s5 + $0x78] sm:$0xff]  ;;  %v1900_v54 = vld [vmem:[%s5683_s5 + $0xf0] sm:$0xff] }
 0x384   :  { %v1567_v3 = vmax.f32 %v1423_v61, 0.0 }
 0x385   :  { %3259 = vmatmul.mubr.f32.vlgmr.msra.gmra.mrb[16].mxu0 %v1566_v63  ;;  %v3987_v63 = vpack.c.bf16 %v1871_v36, %v1870_v23  ;;  %v4085_v23 = vld [vmem:[%s5682_s4] sm:$0xf] }
 0x386   :  { %3294 = vmatmul.mubr.f32.vlgmr.msra.gmra.mrb[16].mxu1 %v1567_v3  ;;  %3940 = vmatpush3.bf16.msra.mxu0 %v3939_v29  ;;  %v1873_v3 = vld [vmem:[%s5683_s5 + $0x18] sm:$0xff] }
 0x387   :  { %3964 = vmatpush3.bf16.msra.mxu1 %v3963_v32  ;;  %3941 = vmatprep.subr.bf16.mxu0 %v4089_v0 }
 0x388   :  { %3965 = vmatprep.subr.bf16.mxu1 %v4089_v0  ;;  %3328 = vmatprep.mubr.msk.f32.mxu0 %vm4090_vm0, %v4091_v8 }
 0x389   :  { %3363 = vmatprep.mubr.msk.f32.mxu1 %vm4090_vm0, %v4091_v8 }
 0x38a   :  { %3943 = vmatpush3.bf16.msra.mxu0 %v3942_v6  ;;  %v1889_v6 = vld [vmem:[%s5683_s5 + $0x98] sm:$0xff] }
 0x38b   :  { %3967 = vmatpush3.bf16.msra.mxu1 %v3966_v7  ;;  %3944 = vmatprep.subr.bf16.mxu0 %v4089_v0  ;;  %v3990_v7 = vpack.c.bf16 %v1873_v3, %v1872_v2  ;;  %v4014_v9 = vpack.c.bf16 %v1889_v6, %v1888_v5  ;;  %v1904_v5 = vld [vmem:[%s5683_s5 + $0x110] sm:$0xff]  ;;  %v1905_v6 = vld [vmem:[%s5683_s5 + $0x118] sm:$0xff] }
 0x38c   :  { %3968 = vmatprep.subr.bf16.mxu1 %v4089_v0 }
 0x38e   :  { %3946 = vmatpush3.bf16.msra.mxu0 %v3945_v13  ;;  %v1891_v13 = vld [vmem:[%s5683_s5 + $0xa8] sm:$0xff] }
 0x38f   :  { %3970 = vmatpush3.bf16.msra.mxu1 %v3969_v14  ;;  %3947 = vmatprep.subr.bf16.mxu0 %v4089_v0  ;;  %v3993_v14 = vpack.c.bf16 %v1875_v11, %v1874_v10  ;;  %v4017_v15 = vpack.c.bf16 %v1891_v13, %v1890_v12  ;;  %v1921_v10 = vld [vmem:[%s5683_s5 + $0x198] sm:$0xff]  ;;  %v1907_v12 = vld [vmem:[%s5683_s5 + $0x128] sm:$0xff]  ;;  %v1922_v13 = vld [vmem:[%s5683_s5 + $0x1a0] sm:$0xff] }
 0x390   :  { %3971 = vmatprep.subr.bf16.mxu1 %v4089_v0 }
 0x392   :  { %3949 = vmatpush3.bf16.msra.mxu0 %v3948_v25  ;;  %v1893_v25 = vld [vmem:[%s5683_s5 + $0xb8] sm:$0xff] }
 0x393   :  { %3973 = vmatpush3.bf16.msra.mxu1 %v3972_v26  ;;  %3950 = vmatprep.subr.bf16.mxu0 %v4089_v0  ;;  %v3996_v26 = vpack.c.bf16 %v1877_v17, %v1876_v16  ;;  %v4020_v27 = vpack.c.bf16 %v1893_v25, %v1892_v19  ;;  %v1908_v17 = vld [vmem:[%s5683_s5 + $0x130] sm:$0xff]  ;;  %v1909_v19 = vld [vmem:[%s5683_s5 + $0x138] sm:$0xff] }
 0x394   :  { %3974 = vmatprep.subr.bf16.mxu1 %v4089_v0  ;;  %v1925_v25 = vld [vmem:[%s5683_s5 + $0x1b8] sm:$0xff] }
 0x396   :  { %3952 = vmatpush3.bf16.msra.mxu0 %v3951_v34  ;;  %v1895_v34 = vld [vmem:[%s5683_s5 + $0xc8] sm:$0xff] }
 0x397   :  { %3976 = vmatpush3.bf16.msra.mxu1 %v3975_v35  ;;  %3953 = vmatprep.subr.bf16.mxu0 %v4089_v0  ;;  %v3999_v35 = vpack.c.bf16 %v1879_v30, %v1878_v28  ;;  %v4023_v37 = vpack.c.bf16 %v1895_v34, %v1894_v31  ;;  %v1910_v28 = vld [vmem:[%s5683_s5 + $0x140] sm:$0xff]  ;;  %v1911_v30 = vld [vmem:[%s5683_s5 + $0x148] sm:$0xff] }
 0x398   :  { %3977 = vmatprep.subr.bf16.mxu1 %v4089_v0  ;;  %v1926_v31 = vld [vmem:[%s5683_s5 + $0x1c0] sm:$0xff]  ;;  %v1927_v34 = vld [vmem:[%s5683_s5 + $0x1c8] sm:$0xff] }
 0x39a   :  { %3955 = vmatpush3.bf16.msra.mxu0 %v3954_v41  ;;  %v1897_v41 = vld [vmem:[%s5683_s5 + $0xd8] sm:$0xff] }
 0x39b   :  { %3979 = vmatpush3.bf16.msra.mxu1 %v3978_v42  ;;  %3956 = vmatprep.subr.bf16.mxu0 %v4089_v0  ;;  %v4002_v42 = vpack.c.bf16 %v1881_v39, %v1880_v38  ;;  %v4026_v43 = vpack.c.bf16 %v1897_v41, %v1896_v40  ;;  %v1912_v38 = vld [vmem:[%s5683_s5 + $0x150] sm:$0xff]  ;;  %v1913_v39 = vld [vmem:[%s5683_s5 + $0x158] sm:$0xff] }
 0x39c   :  { %3980 = vmatprep.subr.bf16.mxu1 %v4089_v0  ;;  %v1928_v40 = vld [vmem:[%s5683_s5 + $0x1d0] sm:$0xff]  ;;  %v1929_v41 = vld [vmem:[%s5683_s5 + $0x1d8] sm:$0xff] }
 0x39e   :  { %3958 = vmatpush3.bf16.msra.mxu0 %v3957_v47  ;;  %v1899_v47 = vld [vmem:[%s5683_s5 + $0xe8] sm:$0xff] }
 0x39f   :  { %3982 = vmatpush3.bf16.msra.mxu1 %v3981_v48  ;;  %3959 = vmatprep.subr.bf16.mxu0 %v4089_v0  ;;  %v4005_v48 = vpack.c.bf16 %v1883_v45, %v1882_v44  ;;  %v4029_v49 = vpack.c.bf16 %v1899_v47, %v1898_v46  ;;  %v1914_v44 = vld [vmem:[%s5683_s5 + $0x160] sm:$0xff]  ;;  %v1915_v45 = vld [vmem:[%s5683_s5 + $0x168] sm:$0xff] }
 0x3a0   :  { %v1492_v60 = vpop.f32.mrb[14].mxu0  ;;  %3983 = vmatprep.subr.bf16.mxu1 %v4089_v0  ;;  %v1930_v46 = vld [vmem:[%s5683_s5 + $0x1e0] sm:$0xff]  ;;  %v1931_v47 = vld [vmem:[%s5683_s5 + $0x1e8] sm:$0xff] }
 0x3a1   :  { %v1493_v51 = vadd.f32 %v1492_v60, %v1281_v55  ;;  %v1562_v24 = vpop.f32.mrb[14].mxu1  ;;  %v3190_v61 = vpop.f32.mrb[15].mxu0  ;;  %v4008_v55 = vpack.c.bf16 %v1885_v22, %v1884_v50  ;;  %v4086_v60 = vld [vmem:[%s5682_s4 + $0x4] sm:$0xf]  ;;  %v1916_v50 = vld [vmem:[%s5683_s5 + $0x170] sm:$0xff]  ;;  %v1917_v22 = vld [vmem:[%s5683_s5 + $0x178] sm:$0xff] }
 0x3a2   :  { %v1563_v62 = vadd.f32 %v1562_v24, %v1285_v56  ;;  %v3225_v29 = vpop.f32.mrb[15].mxu1  ;;  %3961 = vmatpush3.bf16.msra.mxu0 %v3960_v57  ;;  %v1901_v56 = vld [vmem:[%s5683_s5 + $0xf8] sm:$0xff]  ;;  %v1918_v24 = vld [vmem:[%s5683_s5 + $0x180] sm:$0xff]  ;;  %v1919_v61 = vld [vmem:[%s5683_s5 + $0x188] sm:$0xff] }
 0x3a3   :  { %v1568_v32 = vmax.f32 %v1493_v51, 0.0  ;;  %3985 = vmatpush3.bf16.msra.mxu1 %v3984_v58  ;;  %3986 = vmatprep.subr.bf16.mxu0 %v4089_v0  ;;  %v4032_v57 = vpack.c.bf16 %v1901_v56, %v1900_v54  ;;  %v5518_v58 = vsub.s32 3, %v4750_v21  ;;  %v1903_v21 = vld [vmem:[%s5683_s5 + $0x108] sm:$0xff]  ;;  %v1932_v54 = vld [vmem:[%s5683_s5 + $0x1f0] sm:$0xff] }
 0x3a4   :  { %v1569_v4 = vmax.f32 %v1563_v62, 0.0  ;;  %4010 = vmatprep.subr.bf16.mxu1 %v4089_v0  ;;  %v4035_v2 = vpack.c.bf16 %v1903_v21, %v1902_v20  ;;  %v4087_v56 = vld [vmem:[%s5682_s4 + $0x8] sm:$0xf] }
 0x3a5   :  { %3329 = vmatmul.mubr.f32.vlgmr.msra.gmra.mrb[18].mxu0 %v1568_v32  ;;  %v1573_v36 = vrot.slane %v4085_v23, %v5518_v58  ;;  %v1577_v18 = vrot.slane %v4086_v60, %v5518_v58  ;;  %v4088_v23 = vld [vmem:[%s5682_s4 + $0xc] sm:$0xf]  ;;  %v4056_v60 = vpack.c.bf16 %v1917_v22, %v1916_v50 }
 0x3a6   :  { %3364 = vmatmul.mubr.f32.vlgmr.msra.gmra.mrb[18].mxu1 %v1569_v4  ;;  %3988 = vmatpush3.bf16.msra.mxu0 %v3987_v63  ;;  %v4059_v4 = vpack.c.bf16 %v1919_v61, %v1918_v24 }
 0x3a7   :  { %4012 = vmatpush3.bf16.msra.mxu1 %v4011_v1  ;;  %3989 = vmatprep.subr.bf16.mxu0 %v4089_v0 }
 0x3a8   :  { %4013 = vmatprep.subr.bf16.mxu1 %v4089_v0  ;;  %3398 = vmatprep.mubr.msk.f32.mxu0 %vm4090_vm0, %v4091_v8 }
 0x3a9   :  { %3433 = vmatprep.mubr.msk.f32.mxu1 %vm4090_vm0, %v4091_v8 }
 0x3aa   :  { %3991 = vmatpush3.bf16.msra.mxu0 %v3990_v7 }
 0x3ab   :  { %4015 = vmatpush3.bf16.msra.mxu1 %v4014_v9  ;;  %3992 = vmatprep.subr.bf16.mxu0 %v4089_v0  ;;  %v1920_v9 = vld [vmem:[%s5683_s5 + $0x190] sm:$0xff] }
 0x3ac   :  { %4016 = vmatprep.subr.bf16.mxu1 %v4089_v0  ;;  %v4062_v11 = vpack.c.bf16 %v1921_v10, %v1920_v9 }
 0x3ae   :  { %3994 = vmatpush3.bf16.msra.mxu0 %v3993_v14  ;;  %v1923_v14 = vld [vmem:[%s5683_s5 + $0x1a8] sm:$0xff] }
 0x3af   :  { %4018 = vmatpush3.bf16.msra.mxu1 %v4017_v15  ;;  %3995 = vmatprep.subr.bf16.mxu0 %v4089_v0  ;;  %v4065_v16 = vpack.c.bf16 %v1923_v14, %v1922_v13 }
 0x3b0   :  { %4019 = vmatprep.subr.bf16.mxu1 %v4089_v0 }
 0x3b2   :  { %3997 = vmatpush3.bf16.msra.mxu0 %v3996_v26  ;;  %v4044_v26 = vpack.c.bf16 %v1909_v19, %v1908_v17 }
 0x3b3   :  { %4021 = vmatpush3.bf16.msra.mxu1 %v4020_v27  ;;  %3998 = vmatprep.subr.bf16.mxu0 %v4089_v0 }
 0x3b4   :  { %4022 = vmatprep.subr.bf16.mxu1 %v4089_v0 }
 0x3b6   :  { %4000 = vmatpush3.bf16.msra.mxu0 %v3999_v35  ;;  %v4047_v35 = vpack.c.bf16 %v1911_v30, %v1910_v28 }
 0x3b7   :  { %4024 = vmatpush3.bf16.msra.mxu1 %v4023_v37  ;;  %4001 = vmatprep.subr.bf16.mxu0 %v4089_v0  ;;  %v4071_v37 = vpack.c.bf16 %v1927_v34, %v1926_v31 }
 0x3b8   :  { %4025 = vmatprep.subr.bf16.mxu1 %v4089_v0 }
 0x3ba   :  { %4003 = vmatpush3.bf16.msra.mxu0 %v4002_v42  ;;  %v4050_v42 = vpack.c.bf16 %v1913_v39, %v1912_v38 }
 0x3bb   :  { %4027 = vmatpush3.bf16.msra.mxu1 %v4026_v43  ;;  %4004 = vmatprep.subr.bf16.mxu0 %v4089_v0  ;;  %v4074_v43 = vpack.c.bf16 %v1929_v41, %v1928_v40 }
 0x3bc   :  { %4028 = vmatprep.subr.bf16.mxu1 %v4089_v0 }
 0x3be   :  { %4006 = vmatpush3.bf16.msra.mxu0 %v4005_v48  ;;  %v4053_v48 = vpack.c.bf16 %v1915_v45, %v1914_v44 }
 0x3bf   :  { %4030 = vmatpush3.bf16.msra.mxu1 %v4029_v49  ;;  %4007 = vmatprep.subr.bf16.mxu0 %v4089_v0  ;;  %v4077_v49 = vpack.c.bf16 %v1931_v47, %v1930_v46 }
 0x3c0   :  { %4031 = vmatprep.subr.bf16.mxu1 %v4089_v0 }
 0x3c2   :  { %4009 = vmatpush3.bf16.msra.mxu0 %v4008_v55  ;;  %v1933_v55 = vld [vmem:[%s5683_s5 + $0x1f8] sm:$0xff] }
 0x3c3   :  { %4033 = vmatpush3.bf16.msra.mxu1 %v4032_v57  ;;  %4034 = vmatprep.subr.bf16.mxu0 %v4089_v0  ;;  %v1581_v57 = vrot.slane %v4087_v56, %v5518_v58 }
 0x3c4   :  { %4058 = vmatprep.subr.bf16.mxu1 %v4089_v0 }
 0x458   :  { %v1652_v51 = vpop.f32.mrb[16].mxu0 }
 0x459   :  { %v1653_v62 = vadd.f32 %v1652_v51, %v1573_v36  ;;  %v1722_v29 = vpop.f32.mrb[16].mxu1  ;;  %v3260_v63 = vpop.f32.mrb[17].mxu0  ;;  %v1585_v36 = vrot.slane %v4088_v23, %v5518_v58  ;;  %v2254_v58 = vld [vmem:[%s5684_s6] ss:$0 sm:$0xff] }
 0x45a   :  { %v1723_v32 = vadd.f32 %v1722_v29, %v1577_v18  ;;  %v3295_v1 = vpop.f32.mrb[17].mxu1  ;;  %v4080_v18 = vpack.c.bf16 %v1933_v55, %v1932_v54 }
 0x45b   :  { %v1866_v3 = vadd.f32 %v1653_v62, %v5035_v52  ;;  %v4038_v52 = vpack.c.bf16 %v1905_v6, %v1904_v5 }
 0x45c   :  { %v1867_v7 = vadd.f32 %v1723_v32, %v5038_v53  ;;  %v1906_v53 = vld [vmem:[%s5683_s5 + $0x120] sm:$0xff] }
 0x45d   :  { %3399 = vmatmul.mubr.f32.vlgmr.msra.gmra.mrb[20].mxu0 %v1866_v3  ;;  %v4041_v15 = vpack.c.bf16 %v1907_v12, %v1906_v53 }
 0x45e   :  { %3434 = vmatmul.mubr.f32.vlgmr.msra.gmra.mrb[20].mxu1 %v1867_v7  ;;  %4036 = vmatpush3.bf16.msra.mxu0 %v4035_v2 }
 0x45f   :  { %4060 = vmatpush3.bf16.msra.mxu1 %v4059_v4  ;;  %4037 = vmatprep.subr.bf16.mxu0 %v4089_v0 }
 0x460   :  { %4061 = vmatprep.subr.bf16.mxu1 %v4089_v0  ;;  %3468 = vmatprep.mubr.msk.f32.mxu0 %vm4090_vm0, %v4091_v8 }
 0x461   :  { %3503 = vmatprep.mubr.msk.f32.mxu1 %vm4090_vm0, %v4091_v8  ;;  %v1924_v8 = vld [vmem:[%s5683_s5 + $0x1b0] sm:$0xff] }
 0x462   :  { %4039 = vmatpush3.bf16.msra.mxu0 %v4038_v52  ;;  %v4068_v27 = vpack.c.bf16 %v1925_v25, %v1924_v8 }
 0x463   :  { %4063 = vmatpush3.bf16.msra.mxu1 %v4062_v11  ;;  %4040 = vmatprep.subr.bf16.mxu0 %v4089_v0 }
 0x464   :  { %4064 = vmatprep.subr.bf16.mxu1 %v4089_v0 }
 0x466   :  { %4042 = vmatpush3.bf16.msra.mxu0 %v4041_v15 }
 0x467   :  { %4066 = vmatpush3.bf16.msra.mxu1 %v4065_v16  ;;  %4043 = vmatprep.subr.bf16.mxu0 %v4089_v0 }
 0x468   :  { %4067 = vmatprep.subr.bf16.mxu1 %v4089_v0 }
 0x46a   :  { %4045 = vmatpush3.bf16.msra.mxu0 %v4044_v26 }
 0x46b   :  { %4069 = vmatpush3.bf16.msra.mxu1 %v4068_v27  ;;  %4046 = vmatprep.subr.bf16.mxu0 %v4089_v0 }
 0x46c   :  { %4070 = vmatprep.subr.bf16.mxu1 %v4089_v0 }
 0x46e   :  { %4048 = vmatpush3.bf16.msra.mxu0 %v4047_v35 }
 0x46f   :  { %4072 = vmatpush3.bf16.msra.mxu1 %v4071_v37  ;;  %4049 = vmatprep.subr.bf16.mxu0 %v4089_v0 }
 0x470   :  { %4073 = vmatprep.subr.bf16.mxu1 %v4089_v0 }
 0x472   :  { %4051 = vmatpush3.bf16.msra.mxu0 %v4050_v42 }
 0x473   :  { %4075 = vmatpush3.bf16.msra.mxu1 %v4074_v43  ;;  %4052 = vmatprep.subr.bf16.mxu0 %v4089_v0 }
 0x474   :  { %4076 = vmatprep.subr.bf16.mxu1 %v4089_v0 }
 0x476   :  { %4054 = vmatpush3.bf16.msra.mxu0 %v4053_v48 }
 0x477   :  { %4078 = vmatpush3.bf16.msra.mxu1 %v4077_v49  ;;  %4055 = vmatprep.subr.bf16.mxu0 %v4089_v0 }
 0x478   :  { %v1792_v20 = vpop.f32.mrb[18].mxu0  ;;  %4079 = vmatprep.subr.bf16.mxu1 %v4089_v0  ;;  %v2255_v0 = vld [vmem:[%s5684_s6 + $0x1] ss:$0 sm:$0xff] }
 0x479   :  { %v1793_v21 = vadd.f32 %v1792_v20, %v1581_v57  ;;  %v1862_v51 = vpop.f32.mrb[18].mxu1  ;;  %v3330_v24 = vpop.f32.mrb[19].mxu0 }
 0x47a   :  { %v1863_v61 = vadd.f32 %v1862_v51, %v1585_v36  ;;  %v3365_v62 = vpop.f32.mrb[19].mxu1  ;;  %4057 = vmatpush3.bf16.msra.mxu0 %v4056_v60 }
 0x47b   :  { %v1868_v29 = vadd.f32 %v1793_v21, %v5161_v59  ;;  %4081 = vmatpush3.bf16.msra.mxu1 %v4080_v18  ;;  %v2256_v59 = vld [vmem:[%s5684_s6 + $0x2] ss:$0 sm:$0xff] }
 0x47c   :  { %v1869_v63 = vadd.f32 %v1863_v61, %v5164_v33  ;;  %v2257_v33 = vld [vmem:[%s5684_s6 + $0x3] ss:$0 sm:$0xff] }
 0x47d   :  { %3469 = vmatmul.mubr.f32.vlgmr.msra.gmra.mrb[22].mxu0 %v1868_v29 }
 0x47e   :  { %3504 = vmatmul.mubr.f32.vlgmr.msra.gmra.mrb[22].mxu1 %v1869_v63 }
 0x530   :  { %v2028_v32 = vpop.f32.mrb[20].mxu0 }
 0x531   :  { %v2029_v1 = vadd.f32 %v2254_v58, %v2028_v32  ;;  %v2098_v2 = vpop.f32.mrb[20].mxu1  ;;  %v3400_v3 = vpop.f32.mrb[21].mxu0 }
 0x532   :  { %v2099_v4 = vadd.f32 %v2255_v0, %v2098_v2  ;;  %v3435_v5 = vpop.f32.mrb[21].mxu1 }
 0x533   :  { %2242 = vst [vmem:[%s5685_s7] sm:$0xff] %v2029_v1 }
 0x534   :  { %2243 = vst [vmem:[%s5685_s7 + $0x8] sm:$0xff] %v2099_v4 }
 0x550   :  { %v2168_v6 = vpop.f32.mrb[22].mxu0 }
 0x551   :  { %v2169_v7 = vadd.f32 %v2256_v59, %v2168_v6  ;;  %v2238_v9 = vpop.f32.mrb[22].mxu1  ;;  %v3470_v10 = vpop.f32.mrb[23].mxu0 }
 0x552   :  { %v2239_v52 = vadd.f32 %v2257_v33, %v2238_v9  ;;  %v3505_v11 = vpop.f32.mrb[23].mxu1 }
 0x553   :  { %2244 = vst [vmem:[%s5685_s7 + $0x10] sm:$0xff] %v2169_v7 }
 0x554   :  { %2245 = vst [vmem:[%s5685_s7 + $0x18] sm:$0xff] %v2239_v52 }

</bundles_post_ra>
